<compile_context>
chip_gen: v7x
topology: tpu7x:2x2x1
jax: 0.10.0
libtpu: 0.0.40
codegen_flags: <defaults>
</compile_context>

<pallas_src>
import functools

import jax
import jax.numpy as jnp
from jax.experimental import pallas as pl
from jax.experimental.pallas import tpu as pltpu

_BN_EPS = 1e-5


# ----------------------------------------------------------------------------
# Pallas kernels: y = relu?( A @ W + bias [+ residual] )
#   A: (TM, K) bf16, W: (K, Cout) bf16 (BN scale pre-folded), bias: (1, Cout) f32
# ----------------------------------------------------------------------------
def _matmul_bias_act_kernel(a_ref, w_ref, b_ref, o_ref, *, relu):
    y = jnp.dot(a_ref[...], w_ref[...], preferred_element_type=jnp.float32)
    y = y + b_ref[...]
    if relu:
        y = jnp.maximum(y, 0.0)
    o_ref[...] = y.astype(o_ref.dtype)


def _matmul_bias_res_act_kernel(a_ref, w_ref, b_ref, r_ref, o_ref):
    y = jnp.dot(a_ref[...], w_ref[...], preferred_element_type=jnp.float32)
    y = jnp.maximum(y + b_ref[...] + r_ref[...], 0.0)
    o_ref[...] = y.astype(o_ref.dtype)


def fused_conv_matmul(A, Wm, bias, *, relu=True, residual=None, tm_max=256):
    """One fused conv-as-matmul: relu?(A @ Wm + bias [+ residual]) -> (M, Cout) f32."""
    M, K = A.shape
    Cout = Wm.shape[1]
    TM = M if M <= tm_max else tm_max
    assert M % TM == 0 and (TM == M or TM % 8 == 0), (M, TM)
    grid = (M // TM,)

    in_specs = [
        pl.BlockSpec((TM, K), lambda i: (i, 0)),        # A tile
        pl.BlockSpec((K, Cout), lambda i: (0, 0)),      # packed weights (whole)
        pl.BlockSpec((1, Cout), lambda i: (0, 0)),      # bias row
    ]
    args = [A, Wm, bias]
    if residual is None:
        kernel = functools.partial(_matmul_bias_act_kernel, relu=relu)
    else:
        kernel = _matmul_bias_res_act_kernel
        in_specs.append(pl.BlockSpec((TM, Cout), lambda i: (i, 0)))
        args.append(residual)

    return pl.pallas_call(
        kernel,
        out_shape=jax.ShapeDtypeStruct((M, Cout), jnp.float32),
        grid_spec=pltpu.PrefetchScalarGridSpec(
            num_scalar_prefetch=0,
            grid=grid,
            in_specs=in_specs,
            out_specs=pl.BlockSpec((TM, Cout), lambda i: (i, 0)),
        ),
        compiler_params=pltpu.CompilerParams(
            dimension_semantics=("parallel",)),
    )(*args)


# ----------------------------------------------------------------------------
# im2col glue (NHWC, bf16).  Patch K-order = (ky, kx, ci), matching the packed
# weight layout produced by prepare_encoder_params.
# ----------------------------------------------------------------------------
def _im2col_k4s2p1(x):
    """x: (N, H, W, C) -> (N*(H//2)*(W//2), 16*C) bf16 patches for k=4, s=2, p=1."""
    N, H, W, C = x.shape
    Ho, Wo = H // 2, W // 2
    xp = jnp.pad(x.astype(jnp.bfloat16), ((0, 0), (1, 1), (1, 1), (0, 0)))
    taps = []
    for ky in range(4):
        for kx in range(4):
            taps.append(jax.lax.slice(
                xp,
                (0, ky, kx, 0),
                (N, ky + 2 * (Ho - 1) + 1, kx + 2 * (Wo - 1) + 1, C),
                (1, 2, 2, 1)))
    A = jnp.concatenate(taps, axis=-1)               # (N, Ho, Wo, 16*C)
    return A.reshape(N * Ho * Wo, 16 * C)


def _im2col_k3s1p1(x):
    """x: (N, H, W, C) -> (N*H*W, 9*C) bf16 patches for k=3, s=1, p=1."""
    N, H, W, C = x.shape
    xp = jnp.pad(x.astype(jnp.bfloat16), ((0, 0), (1, 1), (1, 1), (0, 0)))
    taps = [xp[:, dy:dy + H, dx:dx + W, :] for dy in range(3) for dx in range(3)]
    A = jnp.concatenate(taps, axis=-1)               # (N, H, W, 9*C)
    return A.reshape(N * H * W, 9 * C)


# ----------------------------------------------------------------------------
# Layer application (NHWC in/out)
# ----------------------------------------------------------------------------
def _downconv(p, x):
    """DownConv: Conv2d(k=4, s=2, p=1, bias=False) + BN(eval) + ReLU."""
    N, H, W, _ = x.shape
    Ho, Wo = H // 2, W // 2
    Cout = p["w"].shape[1]
    A = _im2col_k4s2p1(x)
    y = fused_conv_matmul(A, p["w"], p["b"], relu=True)
    return y.reshape(N, Ho, Wo, Cout)


def _resblock(p, x):
    """ResBlock: h = relu(bn1(conv1(x)));  out = relu(x + bn2(conv2(h)))."""
    N, H, W, C = x.shape
    h = fused_conv_matmul(_im2col_k3s1p1(x), p["c1"]["w"], p["c1"]["b"], relu=True)
    Ch = p["c1"]["w"].shape[1]
    h = h.reshape(N, H, W, Ch)
    y = fused_conv_matmul(_im2col_k3s1p1(h), p["c2"]["w"], p["c2"]["b"],
                          residual=x.reshape(N * H * W, C))
    return y.reshape(N, H, W, C)


def encoder_forward(packed, x_nchw):
    x = jnp.transpose(x_nchw, (0, 2, 3, 1))          # NHWC internally
    h1 = _downconv(packed["conv1"], x)
    h2 = _downconv(packed["conv2"], h1)
    h3 = _downconv(packed["conv3"], h2)
    h3 = _resblock(packed["resblk1"], h3)
    h3 = _resblock(packed["resblk2"], h3)
    return [jnp.transpose(h, (0, 3, 1, 2)) for h in (h1, h2, h3)]


# ----------------------------------------------------------------------------
# Parameters: raw (PyTorch layout) + one-time packing (matmul layout, BN folded)
# ----------------------------------------------------------------------------
def init_encoder_params(key, in_channels=3, hidden=16):
    keys = iter(jax.random.split(key, 32))

    def conv_w(cout, cin, k):
        std = 1.0 / jnp.sqrt(jnp.float32(cin * k * k))
        return std * jax.random.normal(next(keys), (cout, cin, k, k), jnp.float32)

    def bn(c):
        gamma = 1.0 + 0.1 * jax.random.normal(next(keys), (c,), jnp.float32)
        beta = 0.1 * jax.random.normal(next(keys), (c,), jnp.float32)
        return gamma, beta

    h = hidden
    params = {}
    for name, cin, cout in (("conv1", in_channels, h),
                            ("conv2", h, 2 * h),
                            ("conv3", 2 * h, 4 * h)):
        w = conv_w(cout, cin, 4)
        g, b = bn(cout)
        params[name] = {"w": w, "gamma": g, "beta": b}
    for name in ("resblk1", "resblk2"):
        c = 4 * h
        w1 = conv_w(c, c, 3)
        g1, b1 = bn(c)
        w2 = conv_w(c, c, 3)
        g2, b2 = bn(c)
        params[name] = {"w1": w1, "g1": g1, "b1": b1,
                        "w2": w2, "g2": g2, "b2": b2}
    return params


def prepare_encoder_params(raw):
    """Fold BN (eval) scale into bf16 (K, Cout) matmul weights; bias as f32 row."""
    inv_std = 1.0 / jnp.sqrt(jnp.float32(1.0 + _BN_EPS))  # running_var=1, mean=0

    def pack(w, gamma, beta):
        cout = w.shape[0]
        wm = jnp.transpose(w, (2, 3, 1, 0)).reshape(-1, cout)   # (kH*kW*Cin, Cout)
        wm = wm * (gamma * inv_std)[None, :]
        return {"w": wm.astype(jnp.bfloat16),
                "b": beta.astype(jnp.float32).reshape(1, cout)}

    packed = {}
    for name in ("conv1", "conv2", "conv3"):
        p = raw[name]
        packed[name] = pack(p["w"], p["gamma"], p["beta"])
    for name in ("resblk1", "resblk2"):
        p = raw[name]
        packed[name] = {"c1": pack(p["w1"], p["g1"], p["b1"]),
                        "c2": pack(p["w2"], p["g2"], p["b2"])}
    return packed


# ----------------------------------------------------------------------------
# Pure-JAX (XLA conv) reference for numerical validation
# ----------------------------------------------------------------------------
def _ref_conv_nhwc(x, w, stride, pad):
    return jax.lax.conv_general_dilated(
        x, jnp.transpose(w, (2, 3, 1, 0)),
        window_strides=(stride, stride),
        padding=((pad, pad), (pad, pad)),
        dimension_numbers=("NHWC", "HWIO", "NHWC"))


def encoder_reference(raw, x_nchw):
    inv_std = 1.0 / jnp.sqrt(jnp.float32(1.0 + _BN_EPS))
    x = jnp.transpose(x_nchw, (0, 2, 3, 1))

    def down(p, x):
        y = _ref_conv_nhwc(x, p["w"], 2, 1)
        return jnp.maximum(y * (p["gamma"] * inv_std) + p["beta"], 0.0)

    def res(p, x):
        h = _ref_conv_nhwc(x, p["w1"], 1, 1)
        h = jnp.maximum(h * (p["g1"] * inv_std) + p["b1"], 0.0)
        y = _ref_conv_nhwc(h, p["w2"], 1, 1)
        y = y * (p["g2"] * inv_std) + p["b2"]
        return jnp.maximum(x + y, 0.0)

    h1 = down(raw["conv1"], x)
    h2 = down(raw["conv2"], h1)
    h3 = res(raw["resblk2"], res(raw["resblk1"], down(raw["conv3"], h2)))
    return [jnp.transpose(h, (0, 3, 1, 2)) for h in (h1, h2, h3)]


if __name__ == "__main__":
    key = jax.random.PRNGKey(0)
    k_param, k_x = jax.random.split(key)

    N, C_IN, H, W = 2, 3, 32, 32
    HIDDEN = 16
    x = jax.random.normal(k_x, (N, C_IN, H, W), jnp.float32)

    raw = init_encoder_params(k_param, in_channels=C_IN, hidden=HIDDEN)
    packed = prepare_encoder_params(raw)     # one-time weight packing / BN fold

    xs = jax.jit(encoder_forward)(packed, x)
    xs = jax.block_until_ready(xs)

    assert xs[0].shape == (N, HIDDEN, H // 2, W // 2), xs[0].shape
    assert xs[1].shape == (N, 2 * HIDDEN, H // 4, W // 4), xs[1].shape
    assert xs[2].shape == (N, 4 * HIDDEN, H // 8, W // 8), xs[2].shape

    # Numerical check vs. pure-JAX reference (tolerance covers bf16 matmul inputs).
    xs_ref = encoder_reference(raw, x)
    for got, ref in zip(xs, xs_ref):
        denom = float(jnp.max(jnp.abs(ref))) + 1e-6
        err = float(jnp.max(jnp.abs(got - ref))) / denom
        assert err < 5e-2, err

    print("KERNEL_OK")
</pallas_src>

<mosaic_0001>
module attributes {stable_mosaic.version = 11 : i64} {
  func.func @_matmul_bias_act_kernel(%arg0: i32, %arg1: memref<256x48xbf16, #tpu.memory_space<vmem>>, %arg2: memref<48x16xbf16, #tpu.memory_space<vmem>>, %arg3: memref<1x16xf32, #tpu.memory_space<vmem>>, %arg4: memref<256x16xf32, #tpu.memory_space<vmem>>) attributes {dimension_semantics = [#tpu.dimension_semantics<parallel>], iteration_bounds = array<i64: 2>, scalar_prefetch = 0 : i64, scratch_operands = 0 : i64, tpu.core_type = #tpu.core_type<tc>, window_params = [{transform_indices = @transform_0, window_bounds = array<i64: 256, 48>}, {pipeline_mode = #tpu.pipeline_mode<synchronous>, transform_indices = @transform_1, window_bounds = array<i64: 48, 16>}, {pipeline_mode = #tpu.pipeline_mode<synchronous>, transform_indices = @transform_2, window_bounds = array<i64: 1, 16>}, {transform_indices = @transform_3, window_bounds = array<i64: 256, 16>}]} {
    %c0 = arith.constant 0 : index
    %c0_0 = arith.constant 0 : index
    %0 = vector.load %arg1[%c0, %c0_0] : memref<256x48xbf16, #tpu.memory_space<vmem>>, vector<256x48xbf16>
    %c0_1 = arith.constant 0 : index
    %c0_2 = arith.constant 0 : index
    %1 = vector.load %arg2[%c0_1, %c0_2] : memref<48x16xbf16, #tpu.memory_space<vmem>>, vector<48x16xbf16>
    %cst = arith.constant dense<0.000000e+00> : vector<256x16xf32>
    %2 = tpu.matmul %0, %1, %cst {dimension_numbers = #tpu.dot_dimension_numbers<[1], [0], [0], [1], [0, 0, 1, 1], [], []>} : vector<256x48xbf16>, vector<48x16xbf16>, vector<256x16xf32> -> vector<256x16xf32>
    %c0_3 = arith.constant 0 : index
    %c0_4 = arith.constant 0 : index
    %3 = vector.load %arg3[%c0_3, %c0_4] : memref<1x16xf32, #tpu.memory_space<vmem>>, vector<1x16xf32>
    %4 = vector.broadcast %3 : vector<1x16xf32> to vector<256x16xf32>
    %5 = arith.addf %2, %4 : vector<256x16xf32>
    %cst_5 = arith.constant 0.000000e+00 : f32
    %6 = vector.broadcast %cst_5 : f32 to vector<256x16xf32>
    %7 = arith.maximumf %5, %6 : vector<256x16xf32>
    %c0_6 = arith.constant 0 : index
    %c0_7 = arith.constant 0 : index
    %8 = vector.load %arg4[%c0_6, %c0_7] : memref<256x16xf32, #tpu.memory_space<vmem>>, vector<256x16xf32>
    tpu.vector_store %arg4[%c0_6, %c0_7], %7 {strides = array<i32>} : memref<256x16xf32, #tpu.memory_space<vmem>>, vector<256x16xf32>,
    return
  }
  func.func @transform_0(%arg0: i32) -> (i32, i32) {
    %c0_i32 = arith.constant 0 : i32
    %c0_i32_0 = arith.constant 0 : i32
    return %arg0, %c0_i32 : i32, i32
  }
  func.func @transform_1(%arg0: i32) -> (i32, i32) {
    %c0_i32 = arith.constant 0 : i32
    %c0_i32_0 = arith.constant 0 : i32
    %c0_i32_1 = arith.constant 0 : i32
    return %c0_i32, %c0_i32_0 : i32, i32
  }
  func.func @transform_2(%arg0: i32) -> (i32, i32) {
    %c0_i32 = arith.constant 0 : i32
    %c0_i32_0 = arith.constant 0 : i32
    %c0_i32_1 = arith.constant 0 : i32
    return %c0_i32, %c0_i32_0 : i32, i32
  }
  func.func @transform_3(%arg0: i32) -> (i32, i32) {
    %c0_i32 = arith.constant 0 : i32
    %c0_i32_0 = arith.constant 0 : i32
    return %arg0, %c0_i32 : i32, i32
  }
}

module attributes {stable_mosaic.version = 11 : i64} {
  func.func @_matmul_bias_act_kernel(%arg0: i32, %arg1: memref<128x256xbf16, #tpu.memory_space<vmem>>, %arg2: memref<256x32xbf16, #tpu.memory_space<vmem>>, %arg3: memref<1x32xf32, #tpu.memory_space<vmem>>, %arg4: memref<128x32xf32, #tpu.memory_space<vmem>>) attributes {dimension_semantics = [#tpu.dimension_semantics<parallel>], iteration_bounds = array<i64: 1>, scalar_prefetch = 0 : i64, scratch_operands = 0 : i64, tpu.core_type = #tpu.core_type<tc>, window_params = [{transform_indices = @transform_0, window_bounds = array<i64: 128, 256>}, {pipeline_mode = #tpu.pipeline_mode<synchronous>, transform_indices = @transform_1, window_bounds = array<i64: 256, 32>}, {pipeline_mode = #tpu.pipeline_mode<synchronous>, transform_indices = @transform_2, window_bounds = array<i64: 1, 32>}, {transform_indices = @transform_3, window_bounds = array<i64: 128, 32>}]} {
    %c0 = arith.constant 0 : index
    %c0_0 = arith.constant 0 : index
    %0 = vector.load %arg1[%c0, %c0_0] : memref<128x256xbf16, #tpu.memory_space<vmem>>, vector<128x256xbf16>
    %c0_1 = arith.constant 0 : index
    %c0_2 = arith.constant 0 : index
    %1 = vector.load %arg2[%c0_1, %c0_2] : memref<256x32xbf16, #tpu.memory_space<vmem>>, vector<256x32xbf16>
    %cst = arith.constant dense<0.000000e+00> : vector<128x32xf32>
    %2 = tpu.matmul %0, %1, %cst {dimension_numbers = #tpu.dot_dimension_numbers<[1], [0], [0], [1], [0, 0, 1, 1], [], []>} : vector<128x256xbf16>, vector<256x32xbf16>, vector<128x32xf32> -> vector<128x32xf32>
    %c0_3 = arith.constant 0 : index
    %c0_4 = arith.constant 0 : index
    %3 = vector.load %arg3[%c0_3, %c0_4] : memref<1x32xf32, #tpu.memory_space<vmem>>, vector<1x32xf32>
    %4 = vector.broadcast %3 : vector<1x32xf32> to vector<128x32xf32>
    %5 = arith.addf %2, %4 : vector<128x32xf32>
    %cst_5 = arith.constant 0.000000e+00 : f32
    %6 = vector.broadcast %cst_5 : f32 to vector<128x32xf32>
    %7 = arith.maximumf %5, %6 : vector<128x32xf32>
    %c0_6 = arith.constant 0 : index
    %c0_7 = arith.constant 0 : index
    %8 = vector.load %arg4[%c0_6, %c0_7] : memref<128x32xf32, #tpu.memory_space<vmem>>, vector<128x32xf32>
    tpu.vector_store %arg4[%c0_6, %c0_7], %7 {strides = array<i32>} : memref<128x32xf32, #tpu.memory_space<vmem>>, vector<128x32xf32>,
    return
  }
  func.func @transform_0(%arg0: i32) -> (i32, i32) {
    %c0_i32 = arith.constant 0 : i32
    %c0_i32_0 = arith.constant 0 : i32
    return %arg0, %c0_i32 : i32, i32
  }
  func.func @transform_1(%arg0: i32) -> (i32, i32) {
    %c0_i32 = arith.constant 0 : i32
    %c0_i32_0 = arith.constant 0 : i32
    %c0_i32_1 = arith.constant 0 : i32
    return %c0_i32, %c0_i32_0 : i32, i32
  }
  func.func @transform_2(%arg0: i32) -> (i32, i32) {
    %c0_i32 = arith.constant 0 : i32
    %c0_i32_0 = arith.constant 0 : i32
    %c0_i32_1 = arith.constant 0 : i32
    return %c0_i32, %c0_i32_0 : i32, i32
  }
  func.func @transform_3(%arg0: i32) -> (i32, i32) {
    %c0_i32 = arith.constant 0 : i32
    %c0_i32_0 = arith.constant 0 : i32
    return %arg0, %c0_i32 : i32, i32
  }
}

module attributes {stable_mosaic.version = 11 : i64} {
  func.func @_matmul_bias_act_kernel(%arg0: i32, %arg1: memref<32x512xbf16, #tpu.memory_space<vmem>>, %arg2: memref<512x64xbf16, #tpu.memory_space<vmem>>, %arg3: memref<1x64xf32, #tpu.memory_space<vmem>>, %arg4: memref<32x64xf32, #tpu.memory_space<vmem>>) attributes {dimension_semantics = [#tpu.dimension_semantics<parallel>], iteration_bounds = array<i64: 1>, scalar_prefetch = 0 : i64, scratch_operands = 0 : i64, tpu.core_type = #tpu.core_type<tc>, window_params = [{transform_indices = @transform_0, window_bounds = array<i64: 32, 512>}, {pipeline_mode = #tpu.pipeline_mode<synchronous>, transform_indices = @transform_1, window_bounds = array<i64: 512, 64>}, {pipeline_mode = #tpu.pipeline_mode<synchronous>, transform_indices = @transform_2, window_bounds = array<i64: 1, 64>}, {transform_indices = @transform_3, window_bounds = array<i64: 32, 64>}]} {
    %c0 = arith.constant 0 : index
    %c0_0 = arith.constant 0 : index
    %0 = vector.load %arg1[%c0, %c0_0] : memref<32x512xbf16, #tpu.memory_space<vmem>>, vector<32x512xbf16>
    %c0_1 = arith.constant 0 : index
    %c0_2 = arith.constant 0 : index
    %1 = vector.load %arg2[%c0_1, %c0_2] : memref<512x64xbf16, #tpu.memory_space<vmem>>, vector<512x64xbf16>
    %cst = arith.constant dense<0.000000e+00> : vector<32x64xf32>
    %2 = tpu.matmul %0, %1, %cst {dimension_numbers = #tpu.dot_dimension_numbers<[1], [0], [0], [1], [0, 0, 1, 1], [], []>} : vector<32x512xbf16>, vector<512x64xbf16>, vector<32x64xf32> -> vector<32x64xf32>
    %c0_3 = arith.constant 0 : index
    %c0_4 = arith.constant 0 : index
    %3 = vector.load %arg3[%c0_3, %c0_4] : memref<1x64xf32, #tpu.memory_space<vmem>>, vector<1x64xf32>
    %4 = vector.broadcast %3 : vector<1x64xf32> to vector<32x64xf32>
    %5 = arith.addf %2, %4 : vector<32x64xf32>
    %cst_5 = arith.constant 0.000000e+00 : f32
    %6 = vector.broadcast %cst_5 : f32 to vector<32x64xf32>
    %7 = arith.maximumf %5, %6 : vector<32x64xf32>
    %c0_6 = arith.constant 0 : index
    %c0_7 = arith.constant 0 : index
    %8 = vector.load %arg4[%c0_6, %c0_7] : memref<32x64xf32, #tpu.memory_space<vmem>>, vector<32x64xf32>
    tpu.vector_store %arg4[%c0_6, %c0_7], %7 {strides = array<i32>} : memref<32x64xf32, #tpu.memory_space<vmem>>, vector<32x64xf32>,
    return
  }
  func.func @transform_0(%arg0: i32) -> (i32, i32) {
    %c0_i32 = arith.constant 0 : i32
    %c0_i32_0 = arith.constant 0 : i32
    return %arg0, %c0_i32 : i32, i32
  }
  func.func @transform_1(%arg0: i32) -> (i32, i32) {
    %c0_i32 = arith.constant 0 : i32
    %c0_i32_0 = arith.constant 0 : i32
    %c0_i32_1 = arith.constant 0 : i32
    return %c0_i32, %c0_i32_0 : i32, i32
  }
  func.func @transform_2(%arg0: i32) -> (i32, i32) {
    %c0_i32 = arith.constant 0 : i32
    %c0_i32_0 = arith.constant 0 : i32
    %c0_i32_1 = arith.constant 0 : i32
    return %c0_i32, %c0_i32_0 : i32, i32
  }
  func.func @transform_3(%arg0: i32) -> (i32, i32) {
    %c0_i32 = arith.constant 0 : i32
    %c0_i32_0 = arith.constant 0 : i32
    return %arg0, %c0_i32 : i32, i32
  }
}

module attributes {stable_mosaic.version = 11 : i64} {
  func.func @_matmul_bias_act_kernel(%arg0: i32, %arg1: memref<32x576xbf16, #tpu.memory_space<vmem>>, %arg2: memref<576x64xbf16, #tpu.memory_space<vmem>>, %arg3: memref<1x64xf32, #tpu.memory_space<vmem>>, %arg4: memref<32x64xf32, #tpu.memory_space<vmem>>) attributes {dimension_semantics = [#tpu.dimension_semantics<parallel>], iteration_bounds = array<i64: 1>, scalar_prefetch = 0 : i64, scratch_operands = 0 : i64, tpu.core_type = #tpu.core_type<tc>, window_params = [{transform_indices = @transform_0, window_bounds = array<i64: 32, 576>}, {pipeline_mode = #tpu.pipeline_mode<synchronous>, transform_indices = @transform_1, window_bounds = array<i64: 576, 64>}, {pipeline_mode = #tpu.pipeline_mode<synchronous>, transform_indices = @transform_2, window_bounds = array<i64: 1, 64>}, {transform_indices = @transform_3, window_bounds = array<i64: 32, 64>}]} {
    %c0 = arith.constant 0 : index
    %c0_0 = arith.constant 0 : index
    %0 = vector.load %arg1[%c0, %c0_0] : memref<32x576xbf16, #tpu.memory_space<vmem>>, vector<32x576xbf16>
    %c0_1 = arith.constant 0 : index
    %c0_2 = arith.constant 0 : index
    %1 = vector.load %arg2[%c0_1, %c0_2] : memref<576x64xbf16, #tpu.memory_space<vmem>>, vector<576x64xbf16>
    %cst = arith.constant dense<0.000000e+00> : vector<32x64xf32>
    %2 = tpu.matmul %0, %1, %cst {dimension_numbers = #tpu.dot_dimension_numbers<[1], [0], [0], [1], [0, 0, 1, 1], [], []>} : vector<32x576xbf16>, vector<576x64xbf16>, vector<32x64xf32> -> vector<32x64xf32>
    %c0_3 = arith.constant 0 : index
    %c0_4 = arith.constant 0 : index
    %3 = vector.load %arg3[%c0_3, %c0_4] : memref<1x64xf32, #tpu.memory_space<vmem>>, vector<1x64xf32>
    %4 = vector.broadcast %3 : vector<1x64xf32> to vector<32x64xf32>
    %5 = arith.addf %2, %4 : vector<32x64xf32>
    %cst_5 = arith.constant 0.000000e+00 : f32
    %6 = vector.broadcast %cst_5 : f32 to vector<32x64xf32>
    %7 = arith.maximumf %5, %6 : vector<32x64xf32>
    %c0_6 = arith.constant 0 : index
    %c0_7 = arith.constant 0 : index
    %8 = vector.load %arg4[%c0_6, %c0_7] : memref<32x64xf32, #tpu.memory_space<vmem>>, vector<32x64xf32>
    tpu.vector_store %arg4[%c0_6, %c0_7], %7 {strides = array<i32>} : memref<32x64xf32, #tpu.memory_space<vmem>>, vector<32x64xf32>,
    return
  }
  func.func @transform_0(%arg0: i32) -> (i32, i32) {
    %c0_i32 = arith.constant 0 : i32
    %c0_i32_0 = arith.constant 0 : i32
    return %arg0, %c0_i32 : i32, i32
  }
  func.func @transform_1(%arg0: i32) -> (i32, i32) {
    %c0_i32 = arith.constant 0 : i32
    %c0_i32_0 = arith.constant 0 : i32
    %c0_i32_1 = arith.constant 0 : i32
    return %c0_i32, %c0_i32_0 : i32, i32
  }
  func.func @transform_2(%arg0: i32) -> (i32, i32) {
    %c0_i32 = arith.constant 0 : i32
    %c0_i32_0 = arith.constant 0 : i32
    %c0_i32_1 = arith.constant 0 : i32
    return %c0_i32, %c0_i32_0 : i32, i32
  }
  func.func @transform_3(%arg0: i32) -> (i32, i32) {
    %c0_i32 = arith.constant 0 : i32
    %c0_i32_0 = arith.constant 0 : i32
    return %arg0, %c0_i32 : i32, i32
  }
}

module attributes {stable_mosaic.version = 11 : i64} {
  func.func @_matmul_bias_res_act_kernel(%arg0: i32, %arg1: memref<32x576xbf16, #tpu.memory_space<vmem>>, %arg2: memref<576x64xbf16, #tpu.memory_space<vmem>>, %arg3: memref<1x64xf32, #tpu.memory_space<vmem>>, %arg4: memref<32x64xf32, #tpu.memory_space<vmem>>, %arg5: memref<32x64xf32, #tpu.memory_space<vmem>>) attributes {dimension_semantics = [#tpu.dimension_semantics<parallel>], iteration_bounds = array<i64: 1>, scalar_prefetch = 0 : i64, scratch_operands = 0 : i64, tpu.core_type = #tpu.core_type<tc>, window_params = [{transform_indices = @transform_0, window_bounds = array<i64: 32, 576>}, {pipeline_mode = #tpu.pipeline_mode<synchronous>, transform_indices = @transform_1, window_bounds = array<i64: 576, 64>}, {pipeline_mode = #tpu.pipeline_mode<synchronous>, transform_indices = @transform_2, window_bounds = array<i64: 1, 64>}, {transform_indices = @transform_3, window_bounds = array<i64: 32, 64>}, {transform_indices = @transform_4, window_bounds = array<i64: 32, 64>}]} {
    %c0 = arith.constant 0 : index
    %c0_0 = arith.constant 0 : index
    %0 = vector.load %arg1[%c0, %c0_0] : memref<32x576xbf16, #tpu.memory_space<vmem>>, vector<32x576xbf16>
    %c0_1 = arith.constant 0 : index
    %c0_2 = arith.constant 0 : index
    %1 = vector.load %arg2[%c0_1, %c0_2] : memref<576x64xbf16, #tpu.memory_space<vmem>>, vector<576x64xbf16>
    %cst = arith.constant dense<0.000000e+00> : vector<32x64xf32>
    %2 = tpu.matmul %0, %1, %cst {dimension_numbers = #tpu.dot_dimension_numbers<[1], [0], [0], [1], [0, 0, 1, 1], [], []>} : vector<32x576xbf16>, vector<576x64xbf16>, vector<32x64xf32> -> vector<32x64xf32>
    %c0_3 = arith.constant 0 : index
    %c0_4 = arith.constant 0 : index
    %3 = vector.load %arg3[%c0_3, %c0_4] : memref<1x64xf32, #tpu.memory_space<vmem>>, vector<1x64xf32>
    %4 = vector.broadcast %3 : vector<1x64xf32> to vector<32x64xf32>
    %5 = arith.addf %2, %4 : vector<32x64xf32>
    %c0_5 = arith.constant 0 : index
    %c0_6 = arith.constant 0 : index
    %6 = vector.load %arg4[%c0_5, %c0_6] : memref<32x64xf32, #tpu.memory_space<vmem>>, vector<32x64xf32>
    %7 = arith.addf %5, %6 : vector<32x64xf32>
    %cst_7 = arith.constant 0.000000e+00 : f32
    %8 = vector.broadcast %cst_7 : f32 to vector<32x64xf32>
    %9 = arith.maximumf %7, %8 : vector<32x64xf32>
    %c0_8 = arith.constant 0 : index
    %c0_9 = arith.constant 0 : index
    %10 = vector.load %arg5[%c0_8, %c0_9] : memref<32x64xf32, #tpu.memory_space<vmem>>, vector<32x64xf32>
    tpu.vector_store %arg5[%c0_8, %c0_9], %9 {strides = array<i32>} : memref<32x64xf32, #tpu.memory_space<vmem>>, vector<32x64xf32>,
    return
  }
  func.func @transform_0(%arg0: i32) -> (i32, i32) {
    %c0_i32 = arith.constant 0 : i32
    %c0_i32_0 = arith.constant 0 : i32
    return %arg0, %c0_i32 : i32, i32
  }
  func.func @transform_1(%arg0: i32) -> (i32, i32) {
    %c0_i32 = arith.constant 0 : i32
    %c0_i32_0 = arith.constant 0 : i32
    %c0_i32_1 = arith.constant 0 : i32
    return %c0_i32, %c0_i32_0 : i32, i32
  }
  func.func @transform_2(%arg0: i32) -> (i32, i32) {
    %c0_i32 = arith.constant 0 : i32
    %c0_i32_0 = arith.constant 0 : i32
    %c0_i32_1 = arith.constant 0 : i32
    return %c0_i32, %c0_i32_0 : i32, i32
  }
  func.func @transform_3(%arg0: i32) -> (i32, i32) {
    %c0_i32 = arith.constant 0 : i32
    %c0_i32_0 = arith.constant 0 : i32
    return %arg0, %c0_i32 : i32, i32
  }
  func.func @transform_4(%arg0: i32) -> (i32, i32) {
    %c0_i32 = arith.constant 0 : i32
    %c0_i32_0 = arith.constant 0 : i32
    return %arg0, %c0_i32 : i32, i32
  }
}

module attributes {stable_mosaic.version = 11 : i64} {
  func.func @_matmul_bias_res_act_kernel(%arg0: i32, %arg1: memref<32x576xbf16, #tpu.memory_space<vmem>>, %arg2: memref<576x64xbf16, #tpu.memory_space<vmem>>, %arg3: memref<1x64xf32, #tpu.memory_space<vmem>>, %arg4: memref<32x64xf32, #tpu.memory_space<vmem>>, %arg5: memref<32x64xf32, #tpu.memory_space<vmem>>) attributes {dimension_semantics = [#tpu.dimension_semantics<parallel>], iteration_bounds = array<i64: 1>, scalar_prefetch = 0 : i64, scratch_operands = 0 : i64, tpu.core_type = #tpu.core_type<tc>, window_params = [{transform_indices = @transform_0, window_bounds = array<i64: 32, 576>}, {pipeline_mode = #tpu.pipeline_mode<synchronous>, transform_indices = @transform_1, window_bounds = array<i64: 576, 64>}, {pipeline_mode = #tpu.pipeline_mode<synchronous>, transform_indices = @transform_2, window_bounds = array<i64: 1, 64>}, {transform_indices = @transform_3, window_bounds = array<i64: 32, 64>}, {transform_indices = @transform_4, window_bounds = array<i64: 32, 64>}]} {
    %c0 = arith.constant 0 : index
    %c0_0 = arith.constant 0 : index
    %0 = vector.load %arg1[%c0, %c0_0] : memref<32x576xbf16, #tpu.memory_space<vmem>>, vector<32x576xbf16>
    %c0_1 = arith.constant 0 : index
    %c0_2 = arith.constant 0 : index
    %1 = vector.load %arg2[%c0_1, %c0_2] : memref<576x64xbf16, #tpu.memory_space<vmem>>, vector<576x64xbf16>
    %cst = arith.constant dense<0.000000e+00> : vector<32x64xf32>
    %2 = tpu.matmul %0, %1, %cst {dimension_numbers = #tpu.dot_dimension_numbers<[1], [0], [0], [1], [0, 0, 1, 1], [], []>} : vector<32x576xbf16>, vector<576x64xbf16>, vector<32x64xf32> -> vector<32x64xf32>
    %c0_3 = arith.constant 0 : index
    %c0_4 = arith.constant 0 : index
    %3 = vector.load %arg3[%c0_3, %c0_4] : memref<1x64xf32, #tpu.memory_space<vmem>>, vector<1x64xf32>
    %4 = vector.broadcast %3 : vector<1x64xf32> to vector<32x64xf32>
    %5 = arith.addf %2, %4 : vector<32x64xf32>
    %c0_5 = arith.constant 0 : index
    %c0_6 = arith.constant 0 : index
    %6 = vector.load %arg4[%c0_5, %c0_6] : memref<32x64xf32, #tpu.memory_space<vmem>>, vector<32x64xf32>
    %7 = arith.addf %5, %6 : vector<32x64xf32>
    %cst_7 = arith.constant 0.000000e+00 : f32
    %8 = vector.broadcast %cst_7 : f32 to vector<32x64xf32>
    %9 = arith.maximumf %7, %8 : vector<32x64xf32>
    %c0_8 = arith.constant 0 : index
    %c0_9 = arith.constant 0 : index
    %10 = vector.load %arg5[%c0_8, %c0_9] : memref<32x64xf32, #tpu.memory_space<vmem>>, vector<32x64xf32>
    tpu.vector_store %arg5[%c0_8, %c0_9], %9 {strides = array<i32>} : memref<32x64xf32, #tpu.memory_space<vmem>>, vector<32x64xf32>,
    return
  }
  func.func @transform_0(%arg0: i32) -> (i32, i32) {
    %c0_i32 = arith.constant 0 : i32
    %c0_i32_0 = arith.constant 0 : i32
    return %arg0, %c0_i32 : i32, i32
  }
  func.func @transform_1(%arg0: i32) -> (i32, i32) {
    %c0_i32 = arith.constant 0 : i32
    %c0_i32_0 = arith.constant 0 : i32
    %c0_i32_1 = arith.constant 0 : i32
    return %c0_i32, %c0_i32_0 : i32, i32
  }
  func.func @transform_2(%arg0: i32) -> (i32, i32) {
    %c0_i32 = arith.constant 0 : i32
    %c0_i32_0 = arith.constant 0 : i32
    %c0_i32_1 = arith.constant 0 : i32
    return %c0_i32, %c0_i32_0 : i32, i32
  }
  func.func @transform_3(%arg0: i32) -> (i32, i32) {
    %c0_i32 = arith.constant 0 : i32
    %c0_i32_0 = arith.constant 0 : i32
    return %arg0, %c0_i32 : i32, i32
  }
  func.func @transform_4(%arg0: i32) -> (i32, i32) {
    %c0_i32 = arith.constant 0 : i32
    %c0_i32_0 = arith.constant 0 : i32
    return %arg0, %c0_i32 : i32, i32
  }
}

</mosaic_0001>

<bundles_post_ra>
// kernel: encoder_forward.7
= control target key start
LH: loop header
LB: loop body
LE: loop exit
PB: predicated region body
PF: predicated region fallthrough
CT: control target
= control target key end

     0   :  { %s814_s12 = smov 0   ;;  %s981_s0 = inlined_call_operand.vmem [shape: bf16[512,48], index: 0, kind: input, shape index: {}]   ;;  %s982_s1 = inlined_call_operand.vmem [shape: bf16[48,16], index: 1, kind: input, shape index: {}]   ;;  %s983_s2 = inlined_call_operand.vmem [shape: f32[1,16], index: 2, kind: input, shape index: {}]   ;;  %s984_s3 = inlined_call_operand.vmem [shape: f32[512,16], index: 3, kind: output, shape index: {}]  }
   0x1 LB: > { %s649_s13 = sadd.s32 4294967295, %s792_s12   ;;  %p653_p0 = scmp.ge.s32.totalorder %s792_s12, 1  ;;  %s792_s12 = sphi %s814_s12, %s13_s12  }
   0x2   : > { %p138_p1 = scmp.lt.s32.totalorder %s792_s12, 3 }
   0x4   : > { %p139_p2 = pnand %p653_p0, %p138_p1 }
   0x5   : > { %v767_v0 = vld [vmem:[%s982_s1] sm:$0xff] (!%p139_p2)   ;;  %s654_s16 = sshll.u32 (!%p139_p2), %s649_s13, 5  ;;  %v768_v1 = vld [vmem:[%s982_s1 + $0x8] sm:$0xff] (!%p139_p2)   ;;  %v769_v2 = vld [vmem:[%s982_s1 + $0x10] sm:$0xff] (!%p139_p2)   ;;  %vm318_vm0 = vcmask (!%p139_p2), 392192   ;;  %vm560_vm1 = vcmask (!%p139_p2), 130048  }
   0x6   : > { %142 = sbr.rel (%p139_p2) target bundleno = 263 (0x107), region = 32  ;;  %p163_p3 = scmp.lt.s32.totalorder (!%p139_p2), %s654_s16, 63  ;;  %715 = vmatprep.subr.bf16.mxu0 (!%p139_p2), %v767_v0  ;;  %753 = vmatprep.subr.bf16.mxu1 (!%p139_p2), %v767_v0  ;;  %v874_v19 = vld [vmem:[%s983_s2] ss:$0 sm:$0xff] (!%p139_p2) }
   0x7   : > { %716 = vmatpush3.bf16.msra.mxu0 (!%p139_p2), %v767_v0  ;;  %756 = vmatpush3.bf16.msra.mxu1 (!%p139_p2), %v767_v0 }
   0x8   : > { %717 = vmatprep.subr.bf16.mxu0 (!%p139_p2), %v768_v1  ;;  %754 = vmatprep.subr.bf16.mxu1 (!%p139_p2), %v768_v1 }
   0xb   : > { %718 = vmatpush3.bf16.msra.mxu0 (!%p139_p2), %v768_v1  ;;  %757 = vmatpush3.bf16.msra.mxu1 (!%p139_p2), %v768_v1 }
   0xc   : > { %719 = vmatprep.subr.bf16.mxu0 (!%p139_p2), %v769_v2  ;;  %755 = vmatprep.subr.bf16.mxu1 (!%p139_p2), %v769_v2 }
   0xd   : > { %s986_s16 = smov (!%p163_p3, %s654_s16), 63 }
   0xe   : > { %s655_s21 = sshll.u32 %s986_s16, 2  ;;  %s657_s27 = sshll.u32 %s986_s16, 3 }
   0xf   : > { %s837_s24 = scalar_lea.vmem %s981_s0, %s655_s21  ;;  %720 = vmatpush3.bf16.msra.mxu0 %v769_v2  ;;  %758 = vmatpush3.bf16.msra.mxu1 %v769_v2  ;;  %s882_s30 = scalar_lea.vmem %s984_s3, %s657_s27 }
  0x10   : > { %v770_v3 = vld [vmem:[%s837_s24] sm:$0xff]   ;;  %v772_v5 = vld [vmem:[%s837_s24 + $0x8] sm:$0xff]   ;;  %v774_v7 = vld [vmem:[%s837_s24 + $0x10] sm:$0xff]  }
  0x11   : > { %v771_v4 = vld [vmem:[%s837_s24 + $0x40] sm:$0xff]   ;;  %721 = vmatprep.mubr.msk.bf16.mxu0 %vm318_vm0, %v770_v3  ;;  %v773_v6 = vld [vmem:[%s837_s24 + $0x48] sm:$0xff]   ;;  %v775_v8 = vld [vmem:[%s837_s24 + $0x50] sm:$0xff]  }
  0x12   : > { %737 = vmatprep.mubr.msk.bf16.mxu1 %vm318_vm0, %v771_v4  ;;  %722 = vmatmul.mubr.msk.bf16.vlgmr.msra.gmra.mrb[0].mxu0 %vm318_vm0, %v772_v5  ;;  %v776_v9 = vld [vmem:[%s837_s24 + $0x18] sm:$0xff]   ;;  %v778_v11 = vld [vmem:[%s837_s24 + $0x20] sm:$0xff]   ;;  %v780_v13 = vld [vmem:[%s837_s24 + $0x28] sm:$0xff]  }
  0x13   : > { %738 = vmatmul.mubr.msk.bf16.vlgmr.msra.gmra.mrb[0].mxu1 %vm318_vm0, %v773_v6  ;;  %725 = vmatprep.mubr.msk.bf16.mxu0 %vm318_vm0, %v774_v7  ;;  %v777_v10 = vld [vmem:[%s837_s24 + $0x58] sm:$0xff]   ;;  %v779_v12 = vld [vmem:[%s837_s24 + $0x60] sm:$0xff]   ;;  %v781_v14 = vld [vmem:[%s837_s24 + $0x68] sm:$0xff]  }
  0x14   : > { %741 = vmatprep.mubr.msk.bf16.mxu1 %vm318_vm0, %v775_v8  ;;  %v782_v15 = vld [vmem:[%s837_s24 + $0x30] sm:$0xff]   ;;  %v784_v17 = vld [vmem:[%s837_s24 + $0x38] sm:$0xff]  }
  0x15   : > { %v783_v16 = vld [vmem:[%s837_s24 + $0x70] sm:$0xff]   ;;  %v785_v18 = vld [vmem:[%s837_s24 + $0x78] sm:$0xff]  }
  0x1a   : > { %726 = vmatmul.mubr.msk.bf16.gmra.mrb[4].mxu0 %vm318_vm0, %v776_v9 }
  0x1b   : > { %742 = vmatmul.mubr.msk.bf16.gmra.mrb[4].mxu1 %vm318_vm0, %v777_v10  ;;  %729 = vmatprep.mubr.msk.bf16.mxu0 %vm318_vm0, %v778_v11 }
  0x1c   : > { %745 = vmatprep.mubr.msk.bf16.mxu1 %vm318_vm0, %v779_v12 }
  0x22   : > { %730 = vmatmul.mubr.msk.bf16.gmra.mrb[8].mxu0 %vm318_vm0, %v780_v13 }
  0x23   : > { %746 = vmatmul.mubr.msk.bf16.gmra.mrb[8].mxu1 %vm318_vm0, %v781_v14  ;;  %733 = vmatprep.mubr.msk.bf16.mxu0 %vm318_vm0, %v782_v15 }
  0x24   : > { %749 = vmatprep.mubr.msk.bf16.mxu1 %vm318_vm0, %v783_v16 }
  0x2a   : > { %734 = vmatmul.mubr.msk.bf16.gmra.mrb[12].mxu0 %vm318_vm0, %v784_v17 }
  0x2b   : > { %750 = vmatmul.mubr.msk.bf16.gmra.mrb[12].mxu1 %vm318_vm0, %v785_v18 }
  0xe5   : > { %v723_v20 = vpop.f32.mrb[0].mxu0 }
  0xe6   : > { %v739_v21 = vpop.f32.mrb[0].mxu1  ;;  %v410_v22 = vadd.f32 %v723_v20, %v874_v19  ;;  %v401_v24 = vpop.f32.mrb[1].mxu0 }
  0xe7   : > { %v474_v23 = vadd.f32 %v739_v21, %v874_v19  ;;  %v465_v25 = vpop.f32.mrb[1].mxu1  ;;  %v402_v26 = vadd.f32 %v874_v19, %v401_v24  ;;  %v724_v28 = vpop.f32.mrb[2].mxu0 }
  0xe8   : > { %v466_v27 = vadd.f32 %v874_v19, %v465_v25  ;;  %v740_v29 = vpop.f32.mrb[2].mxu1  ;;  %v530_v30 = vmax.f32 %v410_v22, 0.0  ;;  %v413_v32 = vadd.f32 %v724_v28, %v874_v19  ;;  %v404_v34 = vpop.f32.mrb[3].mxu0 }
  0xe9   : > { %v546_v31 = vmax.f32 %v474_v23, 0.0  ;;  %v477_v33 = vadd.f32 %v740_v29, %v874_v19  ;;  %v468_v35 = vpop.f32.mrb[3].mxu1  ;;  %v528_v36 = vmax.f32 %v402_v26, 0.0  ;;  %v405_v38 = vadd.f32 %v874_v19, %v404_v34 }
  0xea   : > { %v544_v37 = vmax.f32 %v466_v27, 0.0  ;;  %v469_v39 = vadd.f32 %v874_v19, %v468_v35  ;;  %563 = vst.msk [vmem:[%s882_s30 + $0x10] sm:$0xff] %vm560_vm1, %v530_v30  ;;  %v531_v40 = vmax.f32 %v413_v32, 0.0 }
  0xeb   : > { %579 = vst.msk [vmem:[%s882_s30 + $0x90] sm:$0xff] %vm560_vm1, %v546_v31  ;;  %v547_v41 = vmax.f32 %v477_v33, 0.0  ;;  %561 = vst.msk [vmem:[%s882_s30] sm:$0xff] %vm560_vm1, %v528_v36  ;;  %v529_v42 = vmax.f32 %v405_v38, 0.0 }
  0xec   : > { %577 = vst.msk [vmem:[%s882_s30 + $0x80] sm:$0xff] %vm560_vm1, %v544_v37  ;;  %v545_v43 = vmax.f32 %v469_v39, 0.0  ;;  %564 = vst.msk [vmem:[%s882_s30 + $0x18] sm:$0xff] %vm560_vm1, %v531_v40 }
  0xed   : > { %580 = vst.msk [vmem:[%s882_s30 + $0x98] sm:$0xff] %vm560_vm1, %v547_v41  ;;  %562 = vst.msk [vmem:[%s882_s30 + $0x8] sm:$0xff] %vm560_vm1, %v529_v42  ;;  %v727_v44 = vpop.f32.mrb[4].mxu0 }
  0xee   : > { %578 = vst.msk [vmem:[%s882_s30 + $0x88] sm:$0xff] %vm560_vm1, %v545_v43  ;;  %v743_v45 = vpop.f32.mrb[4].mxu1  ;;  %v426_v46 = vadd.f32 %v727_v44, %v874_v19  ;;  %v417_v48 = vpop.f32.mrb[5].mxu0 }
  0xef   : > { %v490_v47 = vadd.f32 %v743_v45, %v874_v19  ;;  %v481_v49 = vpop.f32.mrb[5].mxu1  ;;  %v418_v50 = vadd.f32 %v874_v19, %v417_v48  ;;  %v728_v52 = vpop.f32.mrb[6].mxu0 }
  0xf0   : > { %v482_v51 = vadd.f32 %v874_v19, %v481_v49  ;;  %v744_v53 = vpop.f32.mrb[6].mxu1  ;;  %v534_v54 = vmax.f32 %v426_v46, 0.0  ;;  %v429_v56 = vadd.f32 %v728_v52, %v874_v19  ;;  %v420_v58 = vpop.f32.mrb[7].mxu0 }
  0xf1   : > { %v550_v55 = vmax.f32 %v490_v47, 0.0  ;;  %v493_v57 = vadd.f32 %v744_v53, %v874_v19  ;;  %v484_v59 = vpop.f32.mrb[7].mxu1  ;;  %v532_v60 = vmax.f32 %v418_v50, 0.0  ;;  %v421_v62 = vadd.f32 %v874_v19, %v420_v58 }
  0xf2   : > { %v548_v61 = vmax.f32 %v482_v51, 0.0  ;;  %v485_v63 = vadd.f32 %v874_v19, %v484_v59  ;;  %567 = vst.msk [vmem:[%s882_s30 + $0x30] sm:$0xff] %vm560_vm1, %v534_v54  ;;  %v535_v0 = vmax.f32 %v429_v56, 0.0 }
  0xf3   : > { %583 = vst.msk [vmem:[%s882_s30 + $0xb0] sm:$0xff] %vm560_vm1, %v550_v55  ;;  %v551_v1 = vmax.f32 %v493_v57, 0.0  ;;  %565 = vst.msk [vmem:[%s882_s30 + $0x20] sm:$0xff] %vm560_vm1, %v532_v60  ;;  %v533_v2 = vmax.f32 %v421_v62, 0.0 }
  0xf4   : > { %581 = vst.msk [vmem:[%s882_s30 + $0xa0] sm:$0xff] %vm560_vm1, %v548_v61  ;;  %v549_v3 = vmax.f32 %v485_v63, 0.0  ;;  %568 = vst.msk [vmem:[%s882_s30 + $0x38] sm:$0xff] %vm560_vm1, %v535_v0 }
  0xf5   : > { %584 = vst.msk [vmem:[%s882_s30 + $0xb8] sm:$0xff] %vm560_vm1, %v551_v1  ;;  %566 = vst.msk [vmem:[%s882_s30 + $0x28] sm:$0xff] %vm560_vm1, %v533_v2  ;;  %v731_v4 = vpop.f32.mrb[8].mxu0 }
  0xf6   : > { %582 = vst.msk [vmem:[%s882_s30 + $0xa8] sm:$0xff] %vm560_vm1, %v549_v3  ;;  %v747_v5 = vpop.f32.mrb[8].mxu1  ;;  %v442_v6 = vadd.f32 %v731_v4, %v874_v19  ;;  %v433_v8 = vpop.f32.mrb[9].mxu0 }
  0xf7   : > { %v506_v7 = vadd.f32 %v747_v5, %v874_v19  ;;  %v497_v9 = vpop.f32.mrb[9].mxu1  ;;  %v434_v10 = vadd.f32 %v874_v19, %v433_v8  ;;  %v732_v12 = vpop.f32.mrb[10].mxu0 }
  0xf8   : > { %v498_v11 = vadd.f32 %v874_v19, %v497_v9  ;;  %v748_v13 = vpop.f32.mrb[10].mxu1  ;;  %v538_v14 = vmax.f32 %v442_v6, 0.0  ;;  %v445_v16 = vadd.f32 %v732_v12, %v874_v19  ;;  %v436_v18 = vpop.f32.mrb[11].mxu0 }
  0xf9   : > { %v554_v15 = vmax.f32 %v506_v7, 0.0  ;;  %v509_v17 = vadd.f32 %v748_v13, %v874_v19  ;;  %v500_v20 = vpop.f32.mrb[11].mxu1  ;;  %v536_v21 = vmax.f32 %v434_v10, 0.0  ;;  %v437_v23 = vadd.f32 %v874_v19, %v436_v18 }
  0xfa   : > { %v552_v22 = vmax.f32 %v498_v11, 0.0  ;;  %v501_v24 = vadd.f32 %v874_v19, %v500_v20  ;;  %571 = vst.msk [vmem:[%s882_s30 + $0x50] sm:$0xff] %vm560_vm1, %v538_v14  ;;  %v539_v25 = vmax.f32 %v445_v16, 0.0 }
  0xfb   : > { %587 = vst.msk [vmem:[%s882_s30 + $0xd0] sm:$0xff] %vm560_vm1, %v554_v15  ;;  %v555_v26 = vmax.f32 %v509_v17, 0.0  ;;  %569 = vst.msk [vmem:[%s882_s30 + $0x40] sm:$0xff] %vm560_vm1, %v536_v21  ;;  %v537_v27 = vmax.f32 %v437_v23, 0.0 }
  0xfc   : > { %585 = vst.msk [vmem:[%s882_s30 + $0xc0] sm:$0xff] %vm560_vm1, %v552_v22  ;;  %v553_v28 = vmax.f32 %v501_v24, 0.0  ;;  %572 = vst.msk [vmem:[%s882_s30 + $0x58] sm:$0xff] %vm560_vm1, %v539_v25 }
  0xfd   : > { %588 = vst.msk [vmem:[%s882_s30 + $0xd8] sm:$0xff] %vm560_vm1, %v555_v26  ;;  %570 = vst.msk [vmem:[%s882_s30 + $0x48] sm:$0xff] %vm560_vm1, %v537_v27  ;;  %v735_v29 = vpop.f32.mrb[12].mxu0 }
  0xfe   : > { %586 = vst.msk [vmem:[%s882_s30 + $0xc8] sm:$0xff] %vm560_vm1, %v553_v28  ;;  %v751_v30 = vpop.f32.mrb[12].mxu1  ;;  %v458_v31 = vadd.f32 %v735_v29, %v874_v19  ;;  %v449_v33 = vpop.f32.mrb[13].mxu0 }
  0xff   : > { %v522_v32 = vadd.f32 %v751_v30, %v874_v19  ;;  %v513_v34 = vpop.f32.mrb[13].mxu1  ;;  %v450_v35 = vadd.f32 %v874_v19, %v449_v33  ;;  %v736_v37 = vpop.f32.mrb[14].mxu0 }
 0x100   : > { %v514_v36 = vadd.f32 %v874_v19, %v513_v34  ;;  %v752_v38 = vpop.f32.mrb[14].mxu1  ;;  %v542_v39 = vmax.f32 %v458_v31, 0.0  ;;  %v461_v41 = vadd.f32 %v736_v37, %v874_v19  ;;  %v452_v43 = vpop.f32.mrb[15].mxu0 }
 0x101   : > { %v558_v40 = vmax.f32 %v522_v32, 0.0  ;;  %v525_v42 = vadd.f32 %v752_v38, %v874_v19  ;;  %v516_v44 = vpop.f32.mrb[15].mxu1  ;;  %v540_v45 = vmax.f32 %v450_v35, 0.0  ;;  %v453_v47 = vadd.f32 %v874_v19, %v452_v43 }
 0x102   : > { %v556_v46 = vmax.f32 %v514_v36, 0.0  ;;  %v517_v48 = vadd.f32 %v874_v19, %v516_v44  ;;  %575 = vst.msk [vmem:[%s882_s30 + $0x70] sm:$0xff] %vm560_vm1, %v542_v39  ;;  %v543_v49 = vmax.f32 %v461_v41, 0.0 }
 0x103   : > { %591 = vst.msk [vmem:[%s882_s30 + $0xf0] sm:$0xff] %vm560_vm1, %v558_v40  ;;  %v559_v50 = vmax.f32 %v525_v42, 0.0  ;;  %573 = vst.msk [vmem:[%s882_s30 + $0x60] sm:$0xff] %vm560_vm1, %v540_v45  ;;  %v541_v51 = vmax.f32 %v453_v47, 0.0 }
 0x104   : > { %589 = vst.msk [vmem:[%s882_s30 + $0xe0] sm:$0xff] %vm560_vm1, %v556_v46  ;;  %v557_v52 = vmax.f32 %v517_v48, 0.0  ;;  %576 = vst.msk [vmem:[%s882_s30 + $0x78] sm:$0xff] %vm560_vm1, %v543_v49 }
 0x105   : > { %592 = vst.msk [vmem:[%s882_s30 + $0xf8] sm:$0xff] %vm560_vm1, %v559_v50  ;;  %574 = vst.msk [vmem:[%s882_s30 + $0x68] sm:$0xff] %vm560_vm1, %v541_v51 }
 0x106   : > { %590 = vst.msk [vmem:[%s882_s30 + $0xe8] sm:$0xff] %vm560_vm1, %v557_v52 }
 0x107 PF: > { %s13_s12 = sadd.s32 1, %s792_s12  }
 0x108   : > { %p10_p4 = scmp.ge.s32.totalorder %s13_s12, 4  }
 0x10a   :  { %12 = sbr.rel (!%p10_p4) target bundleno = 1 (0x1), region = 62 }

// kernel: encoder_forward.8
= control target key start
LH: loop header
LB: loop body
LE: loop exit
PB: predicated region body
PF: predicated region fallthrough
CT: control target
= control target key end

     0   :  { %vm359_vm0 = vcmask 261120   ;;  %s734_s1 = inlined_call_operand.vmem [shape: bf16[256,32], index: 1, kind: input, shape index: {}]   ;;  %s735_s0 = inlined_call_operand.vmem [shape: bf16[128,256], index: 0, kind: input, shape index: {}]   ;;  %s736_s2 = inlined_call_operand.vmem [shape: f32[1,32], index: 2, kind: input, shape index: {}]   ;;  %s737_s3 = inlined_call_operand.vmem [shape: f32[128,32], index: 3, kind: output, shape index: {}]  }
   0x1   :  { %v493_v0 = vld [vmem:[%s734_s1 + $0x40] sm:$0xff]   ;;  %v495_v2 = vld [vmem:[%s734_s1 + $0x48] sm:$0xff]   ;;  %v497_v4 = vld [vmem:[%s734_s1 + $0x50] sm:$0xff]  }
   0x2   :  { %v494_v1 = vld [vmem:[%s734_s1] sm:$0xff]   ;;  %413 = vmatprep.subr.bf16.mxu0 %v493_v0  ;;  %477 = vmatprep.subr.bf16.mxu1 %v493_v0  ;;  %v496_v3 = vld [vmem:[%s734_s1 + $0x8] sm:$0xff]   ;;  %v498_v5 = vld [vmem:[%s734_s1 + $0x10] sm:$0xff]  }
   0x3   :  { %414 = vmatpush3.bf16.msra.mxu0 %v494_v1  ;;  %485 = vmatpush3.bf16.msra.mxu1 %v494_v1  ;;  %v499_v6 = vld [vmem:[%s734_s1 + $0x58] sm:$0xff]   ;;  %v501_v8 = vld [vmem:[%s734_s1 + $0x60] sm:$0xff]   ;;  %v503_v10 = vld [vmem:[%s734_s1 + $0x68] sm:$0xff]  }
   0x4   :  { %415 = vmatprep.subr.bf16.mxu0 %v495_v2  ;;  %478 = vmatprep.subr.bf16.mxu1 %v495_v2  ;;  %v500_v7 = vld [vmem:[%s734_s1 + $0x18] sm:$0xff]   ;;  %v502_v9 = vld [vmem:[%s734_s1 + $0x20] sm:$0xff]   ;;  %v504_v13 = vld [vmem:[%s734_s1 + $0x28] sm:$0xff]  }
   0x5   :  { %v511_v11 = vld [vmem:[%s735_s0 + $0x4] ss:$8 sps:$4 sm:$0xff]   ;;  %v505_v14 = vld [vmem:[%s734_s1 + $0x70] sm:$0xff]   ;;  %v507_v16 = vld [vmem:[%s734_s1 + $0x78] sm:$0xff]  }
   0x6   :  { %v514_v12 = vld [vmem:[%s735_s0 + $0x44] ss:$8 sps:$4 sm:$0xff]   ;;  %278 = vmatprep.mubr.bf16.mxu0 %v511_v11  ;;  %v506_v15 = vld [vmem:[%s734_s1 + $0x30] sm:$0xff]   ;;  %v508_v17 = vld [vmem:[%s734_s1 + $0x38] sm:$0xff]  }
   0x7   :  { %416 = vmatpush3.bf16.msra.mxu0 %v496_v3  ;;  %486 = vmatpush3.bf16.msra.mxu1 %v496_v3  ;;  %v509_v18 = vld [vmem:[%s735_s0] ss:$8 sps:$4 sm:$0xff]   ;;  %v515_v20 = vld [vmem:[%s735_s0 + $0x14] ss:$8 sps:$4 sm:$0xff]   ;;  %v519_v22 = vld [vmem:[%s735_s0 + $0x10] ss:$8 sps:$4 sm:$0xff]  }
   0x8   :  { %417 = vmatprep.subr.bf16.mxu0 %v497_v4  ;;  %479 = vmatprep.subr.bf16.mxu1 %v497_v4  ;;  %v512_v19 = vld [vmem:[%s735_s0 + $0x40] ss:$8 sps:$4 sm:$0xff]   ;;  %v517_v21 = vld [vmem:[%s735_s0 + $0x54] ss:$8 sps:$4 sm:$0xff]   ;;  %v520_v23 = vld [vmem:[%s735_s0 + $0x50] ss:$8 sps:$4 sm:$0xff]  }
   0x9   :  { %310 = vmatprep.mubr.bf16.mxu1 %v514_v12  ;;  %v521_v24 = vld [vmem:[%s735_s0 + $0x24] ss:$8 sps:$4 sm:$0xff]   ;;  %v525_v26 = vld [vmem:[%s735_s0 + $0x20] ss:$8 sps:$4 sm:$0xff]   ;;  %v527_v28 = vld [vmem:[%s735_s0 + $0x34] ss:$8 sps:$4 sm:$0xff]  }
   0xa   :  { %v523_v25 = vld [vmem:[%s735_s0 + $0x64] ss:$8 sps:$4 sm:$0xff]   ;;  %v526_v27 = vld [vmem:[%s735_s0 + $0x60] ss:$8 sps:$4 sm:$0xff]   ;;  %v529_v29 = vld [vmem:[%s735_s0 + $0x74] ss:$8 sps:$4 sm:$0xff]  }
   0xb   :  { %418 = vmatpush3.bf16.msra.mxu0 %v498_v5  ;;  %487 = vmatpush3.bf16.msra.mxu1 %v498_v5  ;;  %v531_v30 = vld [vmem:[%s735_s0 + $0x30] ss:$8 sps:$4 sm:$0xff]   ;;  %v652_v34 = vld [vmem:[%s736_s2] ss:$0 sm:$0xff] }
   0xc   :  { %419 = vmatprep.subr.bf16.mxu0 %v499_v6  ;;  %480 = vmatprep.subr.bf16.mxu1 %v499_v6  ;;  %v532_v31 = vld [vmem:[%s735_s0 + $0x70] ss:$8 sps:$4 sm:$0xff]  }
   0xf   :  { %420 = vmatpush3.bf16.msra.mxu0 %v500_v7  ;;  %488 = vmatpush3.bf16.msra.mxu1 %v500_v7 }
  0x10   :  { %421 = vmatprep.subr.bf16.mxu0 %v501_v8  ;;  %481 = vmatprep.subr.bf16.mxu1 %v501_v8 }
  0x13   :  { %422 = vmatpush3.bf16.msra.mxu0 %v502_v9  ;;  %489 = vmatpush3.bf16.msra.mxu1 %v502_v9 }
  0x14   :  { %423 = vmatprep.subr.bf16.mxu0 %v503_v10  ;;  %482 = vmatprep.subr.bf16.mxu1 %v503_v10 }
  0x17   :  { %424 = vmatpush3.bf16.msra.mxu0 %v504_v13  ;;  %490 = vmatpush3.bf16.msra.mxu1 %v504_v13 }
  0x18   :  { %425 = vmatprep.subr.bf16.mxu0 %v505_v14  ;;  %483 = vmatprep.subr.bf16.mxu1 %v505_v14 }
  0x1b   :  { %426 = vmatpush3.bf16.msra.mxu0 %v506_v15  ;;  %491 = vmatpush3.bf16.msra.mxu1 %v506_v15 }
  0x1c   :  { %427 = vmatprep.subr.bf16.mxu0 %v507_v16  ;;  %484 = vmatprep.subr.bf16.mxu1 %v507_v16 }
  0x1f   :  { %428 = vmatpush3.bf16.msra.mxu0 %v508_v17  ;;  %492 = vmatpush3.bf16.msra.mxu1 %v508_v17 }
  0x22   :  { %279 = vmatmul.mubr.bf16.vlgmr.msra.gmra.mrb[0].mxu0 %v509_v18  ;;  %311 = vmatmul.mubr.bf16.vlgmr.msra.gmra.mrb[0].mxu1 %v512_v19 }
  0x23   :  { %286 = vmatprep.mubr.bf16.mxu0 %v515_v20  ;;  %318 = vmatprep.mubr.bf16.mxu1 %v517_v21 }
  0x2a   :  { %287 = vmatmul.mubr.bf16.gmra.mrb[4].mxu0 %v519_v22  ;;  %319 = vmatmul.mubr.bf16.gmra.mrb[4].mxu1 %v520_v23 }
  0x2b   :  { %294 = vmatprep.mubr.bf16.mxu0 %v521_v24  ;;  %326 = vmatprep.mubr.bf16.mxu1 %v523_v25 }
  0x32   :  { %295 = vmatmul.mubr.bf16.gmra.mrb[8].mxu0 %v525_v26  ;;  %327 = vmatmul.mubr.bf16.gmra.mrb[8].mxu1 %v526_v27 }
  0x33   :  { %302 = vmatprep.mubr.bf16.mxu0 %v527_v28  ;;  %334 = vmatprep.mubr.bf16.mxu1 %v529_v29 }
  0x3a   :  { %303 = vmatmul.mubr.bf16.gmra.mrb[12].mxu0 %v531_v30  ;;  %335 = vmatmul.mubr.bf16.gmra.mrb[12].mxu1 %v532_v31 }
  0xf5   :  { %v429_v32 = vpop.f32.mrb[0].mxu0  ;;  %v453_v33 = vpop.f32.mrb[0].mxu1 }
  0xf6   :  { %v430_v35 = vpop.f32.mrb[1].mxu0  ;;  %v454_v36 = vpop.f32.mrb[1].mxu1 }
  0xf7   :  { %v431_v37 = vadd.f32 %v430_v35, %v429_v32  ;;  %v455_v38 = vadd.f32 %v454_v36, %v453_v33  ;;  %v432_v39 = vpop.f32.mrb[2].mxu0  ;;  %v456_v40 = vpop.f32.mrb[2].mxu1 }
  0xf8   :  { %v433_v41 = vpop.f32.mrb[3].mxu0  ;;  %v457_v42 = vpop.f32.mrb[3].mxu1 }
  0xf9   :  { %v281_v43 = vadd.f32 %v431_v37, %v652_v34  ;;  %v313_v44 = vadd.f32 %v455_v38, %v652_v34  ;;  %v434_v45 = vadd.f32 %v433_v41, %v432_v39  ;;  %v458_v46 = vadd.f32 %v457_v42, %v456_v40 }
  0xfb   :  { %v343_v47 = vmax.f32 %v281_v43, 0.0  ;;  %v351_v48 = vmax.f32 %v313_v44, 0.0  ;;  %v284_v49 = vadd.f32 %v434_v45, %v652_v34  ;;  %v316_v50 = vadd.f32 %v458_v46, %v652_v34 }
  0xfd   :  { %360 = vst.msk [vmem:[%s737_s3] sm:$0xff] %vm359_vm0, %v343_v47  ;;  %368 = vst.msk [vmem:[%s737_s3 + $0x40] sm:$0xff] %vm359_vm0, %v351_v48  ;;  %v344_v51 = vmax.f32 %v284_v49, 0.0  ;;  %v352_v52 = vmax.f32 %v316_v50, 0.0  ;;  %v435_v53 = vpop.f32.mrb[4].mxu0  ;;  %v459_v54 = vpop.f32.mrb[4].mxu1 }
  0xfe   :  { %v436_v55 = vpop.f32.mrb[5].mxu0  ;;  %v460_v56 = vpop.f32.mrb[5].mxu1 }
  0xff   :  { %361 = vst.msk [vmem:[%s737_s3 + $0x8] sm:$0xff] %vm359_vm0, %v344_v51  ;;  %369 = vst.msk [vmem:[%s737_s3 + $0x48] sm:$0xff] %vm359_vm0, %v352_v52  ;;  %v437_v57 = vadd.f32 %v436_v55, %v435_v53  ;;  %v461_v58 = vadd.f32 %v460_v56, %v459_v54  ;;  %v438_v59 = vpop.f32.mrb[6].mxu0  ;;  %v462_v60 = vpop.f32.mrb[6].mxu1 }
 0x100   :  { %v439_v61 = vpop.f32.mrb[7].mxu0  ;;  %v463_v62 = vpop.f32.mrb[7].mxu1 }
 0x101   :  { %v289_v63 = vadd.f32 %v437_v57, %v652_v34  ;;  %v321_v0 = vadd.f32 %v461_v58, %v652_v34  ;;  %v440_v1 = vadd.f32 %v439_v61, %v438_v59  ;;  %v464_v2 = vadd.f32 %v463_v62, %v462_v60 }
 0x103   :  { %v345_v3 = vmax.f32 %v289_v63, 0.0  ;;  %v353_v4 = vmax.f32 %v321_v0, 0.0  ;;  %v292_v5 = vadd.f32 %v440_v1, %v652_v34  ;;  %v324_v6 = vadd.f32 %v464_v2, %v652_v34 }
 0x105   :  { %362 = vst.msk [vmem:[%s737_s3 + $0x10] sm:$0xff] %vm359_vm0, %v345_v3  ;;  %370 = vst.msk [vmem:[%s737_s3 + $0x50] sm:$0xff] %vm359_vm0, %v353_v4  ;;  %v346_v7 = vmax.f32 %v292_v5, 0.0  ;;  %v354_v8 = vmax.f32 %v324_v6, 0.0  ;;  %v441_v9 = vpop.f32.mrb[8].mxu0  ;;  %v465_v10 = vpop.f32.mrb[8].mxu1 }
 0x106   :  { %v442_v11 = vpop.f32.mrb[9].mxu0  ;;  %v466_v12 = vpop.f32.mrb[9].mxu1 }
 0x107   :  { %363 = vst.msk [vmem:[%s737_s3 + $0x18] sm:$0xff] %vm359_vm0, %v346_v7  ;;  %371 = vst.msk [vmem:[%s737_s3 + $0x58] sm:$0xff] %vm359_vm0, %v354_v8  ;;  %v443_v13 = vadd.f32 %v442_v11, %v441_v9  ;;  %v467_v14 = vadd.f32 %v466_v12, %v465_v10  ;;  %v444_v15 = vpop.f32.mrb[10].mxu0  ;;  %v468_v16 = vpop.f32.mrb[10].mxu1 }
 0x108   :  { %v445_v17 = vpop.f32.mrb[11].mxu0  ;;  %v469_v18 = vpop.f32.mrb[11].mxu1 }
 0x109   :  { %v297_v19 = vadd.f32 %v443_v13, %v652_v34  ;;  %v329_v20 = vadd.f32 %v467_v14, %v652_v34  ;;  %v446_v21 = vadd.f32 %v445_v17, %v444_v15  ;;  %v470_v22 = vadd.f32 %v469_v18, %v468_v16 }
 0x10b   :  { %v347_v23 = vmax.f32 %v297_v19, 0.0  ;;  %v355_v24 = vmax.f32 %v329_v20, 0.0  ;;  %v300_v25 = vadd.f32 %v446_v21, %v652_v34  ;;  %v332_v26 = vadd.f32 %v470_v22, %v652_v34 }
 0x10d   :  { %364 = vst.msk [vmem:[%s737_s3 + $0x20] sm:$0xff] %vm359_vm0, %v347_v23  ;;  %372 = vst.msk [vmem:[%s737_s3 + $0x60] sm:$0xff] %vm359_vm0, %v355_v24  ;;  %v348_v27 = vmax.f32 %v300_v25, 0.0  ;;  %v356_v28 = vmax.f32 %v332_v26, 0.0  ;;  %v447_v29 = vpop.f32.mrb[12].mxu0  ;;  %v471_v30 = vpop.f32.mrb[12].mxu1 }
 0x10e   :  { %v448_v31 = vpop.f32.mrb[13].mxu0  ;;  %v472_v32 = vpop.f32.mrb[13].mxu1 }
 0x10f   :  { %365 = vst.msk [vmem:[%s737_s3 + $0x28] sm:$0xff] %vm359_vm0, %v348_v27  ;;  %373 = vst.msk [vmem:[%s737_s3 + $0x68] sm:$0xff] %vm359_vm0, %v356_v28  ;;  %v449_v33 = vadd.f32 %v448_v31, %v447_v29  ;;  %v473_v35 = vadd.f32 %v472_v32, %v471_v30  ;;  %v450_v36 = vpop.f32.mrb[14].mxu0  ;;  %v474_v37 = vpop.f32.mrb[14].mxu1 }
 0x110   :  { %v451_v38 = vpop.f32.mrb[15].mxu0  ;;  %v475_v39 = vpop.f32.mrb[15].mxu1 }
 0x111   :  { %v305_v40 = vadd.f32 %v449_v33, %v652_v34  ;;  %v337_v41 = vadd.f32 %v473_v35, %v652_v34  ;;  %v452_v42 = vadd.f32 %v451_v38, %v450_v36  ;;  %v476_v43 = vadd.f32 %v475_v39, %v474_v37 }
 0x113   :  { %v349_v44 = vmax.f32 %v305_v40, 0.0  ;;  %v357_v45 = vmax.f32 %v337_v41, 0.0  ;;  %v308_v46 = vadd.f32 %v452_v42, %v652_v34  ;;  %v340_v47 = vadd.f32 %v476_v43, %v652_v34 }
 0x115   :  { %366 = vst.msk [vmem:[%s737_s3 + $0x30] sm:$0xff] %vm359_vm0, %v349_v44  ;;  %374 = vst.msk [vmem:[%s737_s3 + $0x70] sm:$0xff] %vm359_vm0, %v357_v45  ;;  %v350_v48 = vmax.f32 %v308_v46, 0.0  ;;  %v358_v49 = vmax.f32 %v340_v47, 0.0 }
 0x117   :  { %367 = vst.msk [vmem:[%s737_s3 + $0x38] sm:$0xff] %vm359_vm0, %v350_v48  ;;  %375 = vst.msk [vmem:[%s737_s3 + $0x78] sm:$0xff] %vm359_vm0, %v358_v49 }

// kernel: encoder_forward.9
= control target key start
LH: loop header
LB: loop body
LE: loop exit
PB: predicated region body
PF: predicated region fallthrough
CT: control target
= control target key end

     0   :  { %vm428_vm0 = vcmask 523264   ;;  %s737_s1 = inlined_call_operand.vmem [shape: bf16[512,64], index: 1, kind: input, shape index: {}]   ;;  %s738_s0 = inlined_call_operand.vmem [shape: bf16[32,512], index: 0, kind: input, shape index: {}]   ;;  %s739_s2 = inlined_call_operand.vmem [shape: f32[1,64], index: 2, kind: input, shape index: {}]   ;;  %s740_s3 = inlined_call_operand.vmem [shape: f32[32,64], index: 3, kind: output, shape index: {}]  }
   0x1   :  { %v534_v0 = vld [vmem:[%s737_s1 + $0x40] sm:$0xff]   ;;  %v538_v4 = vld [vmem:[%s737_s1 + $0x48] sm:$0xff]   ;;  %v542_v8 = vld [vmem:[%s737_s1 + $0x50] sm:$0xff]  }
   0x2   :  { %v535_v1 = vld [vmem:[%s737_s1 + $0xc0] sm:$0xff]   ;;  %478 = vmatprep.subr.bf16.mxu0 %v534_v0  ;;  %v539_v5 = vld [vmem:[%s737_s1 + $0xc8] sm:$0xff]   ;;  %v543_v9 = vld [vmem:[%s737_s1 + $0xd0] sm:$0xff]  }
   0x3   :  { %v536_v2 = vld [vmem:[%s737_s1] sm:$0xff]   ;;  %506 = vmatprep.subr.bf16.mxu1 %v535_v1  ;;  %v540_v6 = vld [vmem:[%s737_s1 + $0x8] sm:$0xff]   ;;  %v544_v10 = vld [vmem:[%s737_s1 + $0x10] sm:$0xff]  }
   0x4   :  { %v537_v3 = vld [vmem:[%s737_s1 + $0x80] sm:$0xff]   ;;  %479 = vmatpush3.bf16.msra.mxu0 %v536_v2  ;;  %v541_v7 = vld [vmem:[%s737_s1 + $0x88] sm:$0xff]   ;;  %v545_v11 = vld [vmem:[%s737_s1 + $0x90] sm:$0xff]  }
   0x5   :  { %507 = vmatpush3.bf16.msra.mxu1 %v537_v3  ;;  %480 = vmatprep.subr.bf16.mxu0 %v538_v4  ;;  %v546_v12 = vld [vmem:[%s737_s1 + $0x58] sm:$0xff]   ;;  %v550_v16 = vld [vmem:[%s737_s1 + $0x60] sm:$0xff]   ;;  %v554_v20 = vld [vmem:[%s737_s1 + $0x68] sm:$0xff]  }
   0x6   :  { %508 = vmatprep.subr.bf16.mxu1 %v539_v5  ;;  %v547_v13 = vld [vmem:[%s737_s1 + $0xd8] sm:$0xff]   ;;  %v551_v17 = vld [vmem:[%s737_s1 + $0xe0] sm:$0xff]   ;;  %v555_v21 = vld [vmem:[%s737_s1 + $0xe8] sm:$0xff]  }
   0x7   :  { %v548_v14 = vld [vmem:[%s737_s1 + $0x18] sm:$0xff]   ;;  %v552_v18 = vld [vmem:[%s737_s1 + $0x20] sm:$0xff]   ;;  %v556_v22 = vld [vmem:[%s737_s1 + $0x28] sm:$0xff]  }
   0x8   :  { %481 = vmatpush3.bf16.msra.mxu0 %v540_v6  ;;  %v549_v15 = vld [vmem:[%s737_s1 + $0x98] sm:$0xff]   ;;  %v553_v19 = vld [vmem:[%s737_s1 + $0xa0] sm:$0xff]   ;;  %v557_v23 = vld [vmem:[%s737_s1 + $0xa8] sm:$0xff]  }
   0x9   :  { %509 = vmatpush3.bf16.msra.mxu1 %v541_v7  ;;  %482 = vmatprep.subr.bf16.mxu0 %v542_v8  ;;  %v558_v24 = vld [vmem:[%s737_s1 + $0x70] sm:$0xff]   ;;  %v562_v28 = vld [vmem:[%s737_s1 + $0x78] sm:$0xff]   ;;  %v437_v42 = vld [vmem:[%s739_s2] ss:$0 sm:$0xff] }
   0xa   :  { %510 = vmatprep.subr.bf16.mxu1 %v543_v9  ;;  %v559_v25 = vld [vmem:[%s737_s1 + $0xf0] sm:$0xff]   ;;  %v563_v29 = vld [vmem:[%s737_s1 + $0xf8] sm:$0xff]  }
   0xb   :  { %v560_v26 = vld [vmem:[%s737_s1 + $0x30] sm:$0xff]   ;;  %v564_v30 = vld [vmem:[%s737_s1 + $0x38] sm:$0xff]  }
   0xc   :  { %483 = vmatpush3.bf16.msra.mxu0 %v544_v10  ;;  %v561_v27 = vld [vmem:[%s737_s1 + $0xb0] sm:$0xff]   ;;  %v565_v31 = vld [vmem:[%s737_s1 + $0xb8] sm:$0xff]  }
   0xd   :  { %511 = vmatpush3.bf16.msra.mxu1 %v545_v11  ;;  %484 = vmatprep.subr.bf16.mxu0 %v546_v12  ;;  %v566_v32 = vld [vmem:[%s738_s0] ss:$16 sps:$4 sm:$0xff]   ;;  %v568_v33 = vld [vmem:[%s738_s0 + $0x4] ss:$16 sps:$4 sm:$0xff]   ;;  %v569_v34 = vld [vmem:[%s738_s0 + $0x8] ss:$16 sps:$4 sm:$0xff]  }
   0xe   :  { %512 = vmatprep.subr.bf16.mxu1 %v547_v13  ;;  %v571_v35 = vld [vmem:[%s738_s0 + $0xc] ss:$16 sps:$4 sm:$0xff]   ;;  %358 = vmatprep.mubr.bf16.mxu0 %v568_v33  ;;  %v572_v36 = vld [vmem:[%s738_s0 + $0x24] ss:$16 sps:$4 sm:$0xff]   ;;  %v576_v38 = vld [vmem:[%s738_s0 + $0x20] ss:$16 sps:$4 sm:$0xff]  }
   0xf   :  { %407 = vmatprep.mubr.bf16.mxu1 %v571_v35  ;;  %v574_v37 = vld [vmem:[%s738_s0 + $0x2c] ss:$16 sps:$4 sm:$0xff]   ;;  %v577_v39 = vld [vmem:[%s738_s0 + $0x28] ss:$16 sps:$4 sm:$0xff]  }
  0x10   :  { %485 = vmatpush3.bf16.msra.mxu0 %v548_v14 }
  0x11   :  { %513 = vmatpush3.bf16.msra.mxu1 %v549_v15  ;;  %486 = vmatprep.subr.bf16.mxu0 %v550_v16 }
  0x12   :  { %514 = vmatprep.subr.bf16.mxu1 %v551_v17 }
  0x14   :  { %487 = vmatpush3.bf16.msra.mxu0 %v552_v18 }
  0x15   :  { %515 = vmatpush3.bf16.msra.mxu1 %v553_v19  ;;  %488 = vmatprep.subr.bf16.mxu0 %v554_v20 }
  0x16   :  { %516 = vmatprep.subr.bf16.mxu1 %v555_v21 }
  0x18   :  { %489 = vmatpush3.bf16.msra.mxu0 %v556_v22 }
  0x19   :  { %517 = vmatpush3.bf16.msra.mxu1 %v557_v23  ;;  %490 = vmatprep.subr.bf16.mxu0 %v558_v24 }
  0x1a   :  { %518 = vmatprep.subr.bf16.mxu1 %v559_v25 }
  0x1c   :  { %491 = vmatpush3.bf16.msra.mxu0 %v560_v26 }
  0x1d   :  { %519 = vmatpush3.bf16.msra.mxu1 %v561_v27  ;;  %492 = vmatprep.subr.bf16.mxu0 %v562_v28 }
  0x1e   :  { %520 = vmatprep.subr.bf16.mxu1 %v563_v29 }
  0x20   :  { %493 = vmatpush3.bf16.msra.mxu0 %v564_v30 }
  0x21   :  { %521 = vmatpush3.bf16.msra.mxu1 %v565_v31 }
  0x23   :  { %359 = vmatmul.mubr.bf16.vlgmr.msra.gmra.mrb[0].mxu0 %v566_v32 }
  0x24   :  { %408 = vmatmul.mubr.bf16.vlgmr.msra.gmra.mrb[0].mxu1 %v569_v34  ;;  %366 = vmatprep.mubr.bf16.mxu0 %v572_v36 }
  0x25   :  { %415 = vmatprep.mubr.bf16.mxu1 %v574_v37 }
  0x2b   :  { %367 = vmatmul.mubr.bf16.gmra.mrb[4].mxu0 %v576_v38 }
  0x2c   :  { %416 = vmatmul.mubr.bf16.gmra.mrb[4].mxu1 %v577_v39 }
  0xf6   :  { %v494_v40 = vpop.f32.mrb[0].mxu0 }
  0xf7   :  { %v522_v41 = vpop.f32.mrb[0].mxu1  ;;  %v495_v43 = vpop.f32.mrb[1].mxu0 }
  0xf8   :  { %v496_v44 = vadd.f32 %v495_v43, %v494_v40  ;;  %v523_v45 = vpop.f32.mrb[1].mxu1  ;;  %v497_v46 = vpop.f32.mrb[2].mxu0 }
  0xf9   :  { %v524_v47 = vadd.f32 %v523_v45, %v522_v41  ;;  %v525_v48 = vpop.f32.mrb[2].mxu1  ;;  %v498_v49 = vpop.f32.mrb[3].mxu0 }
  0xfa   :  { %v361_v50 = vadd.f32 %v496_v44, %v437_v42  ;;  %v499_v51 = vadd.f32 %v498_v49, %v497_v46  ;;  %v526_v52 = vpop.f32.mrb[3].mxu1 }
  0xfb   :  { %v527_v53 = vadd.f32 %v526_v52, %v525_v48 }
  0xfc   :  { %v410_v54 = vadd.f32 %v524_v47, %v361_v50  ;;  %v364_v55 = vadd.f32 %v499_v51, %v437_v42 }
  0xfe   :  { %v424_v56 = vmax.f32 %v410_v54, 0.0  ;;  %v413_v57 = vadd.f32 %v527_v53, %v364_v55  ;;  %v500_v58 = vpop.f32.mrb[4].mxu0 }
  0xff   :  { %v528_v59 = vpop.f32.mrb[4].mxu1  ;;  %v501_v60 = vpop.f32.mrb[5].mxu0 }
 0x100   :  { %429 = vst.msk [vmem:[%s740_s3] sm:$0xff] %vm428_vm0, %v424_v56  ;;  %v425_v61 = vmax.f32 %v413_v57, 0.0  ;;  %v502_v62 = vadd.f32 %v501_v60, %v500_v58  ;;  %v529_v63 = vpop.f32.mrb[5].mxu1  ;;  %v503_v0 = vpop.f32.mrb[6].mxu0 }
 0x101   :  { %v530_v1 = vadd.f32 %v529_v63, %v528_v59  ;;  %v531_v2 = vpop.f32.mrb[6].mxu1  ;;  %v504_v3 = vpop.f32.mrb[7].mxu0 }
 0x102   :  { %430 = vst.msk [vmem:[%s740_s3 + $0x8] sm:$0xff] %vm428_vm0, %v425_v61  ;;  %v369_v4 = vadd.f32 %v502_v62, %v437_v42  ;;  %v505_v5 = vadd.f32 %v504_v3, %v503_v0  ;;  %v532_v6 = vpop.f32.mrb[7].mxu1 }
 0x103   :  { %v533_v7 = vadd.f32 %v532_v6, %v531_v2 }
 0x104   :  { %v418_v8 = vadd.f32 %v530_v1, %v369_v4  ;;  %v372_v9 = vadd.f32 %v505_v5, %v437_v42 }
 0x106   :  { %v426_v10 = vmax.f32 %v418_v8, 0.0  ;;  %v421_v11 = vadd.f32 %v533_v7, %v372_v9 }
 0x108   :  { %431 = vst.msk [vmem:[%s740_s3 + $0x10] sm:$0xff] %vm428_vm0, %v426_v10  ;;  %v427_v12 = vmax.f32 %v421_v11, 0.0 }
 0x10a   :  { %432 = vst.msk [vmem:[%s740_s3 + $0x18] sm:$0xff] %vm428_vm0, %v427_v12 }

// kernel: encoder_forward.10
= control target key start
LH: loop header
LB: loop body
LE: loop exit
PB: predicated region body
PF: predicated region fallthrough
CT: control target
= control target key end

     0   :  { %vm372_vm0 = vcmask 523264   ;;  %s890_s1 = inlined_call_operand.vmem [shape: bf16[576,64], index: 1, kind: input, shape index: {}]   ;;  %s891_s0 = inlined_call_operand.vmem [shape: bf16[32,576], index: 0, kind: input, shape index: {}]   ;;  %s892_s2 = inlined_call_operand.vmem [shape: f32[1,64], index: 2, kind: input, shape index: {}]   ;;  %s893_s3 = inlined_call_operand.vmem [shape: f32[32,64], index: 3, kind: output, shape index: {}]  }
   0x1   :  { %v661_v0 = vld [vmem:[%s890_s1 + $0x40] sm:$0xff]   ;;  %v665_v4 = vld [vmem:[%s890_s1 + $0x48] sm:$0xff]   ;;  %v669_v8 = vld [vmem:[%s890_s1 + $0x50] sm:$0xff]  }
   0x2   :  { %v662_v1 = vld [vmem:[%s890_s1] sm:$0xff]   ;;  %587 = vmatprep.subr.bf16.mxu0 %v661_v0  ;;  %v666_v5 = vld [vmem:[%s890_s1 + $0x8] sm:$0xff]   ;;  %v670_v9 = vld [vmem:[%s890_s1 + $0x10] sm:$0xff]  }
   0x3   :  { %v663_v2 = vld [vmem:[%s890_s1 + $0xc0] sm:$0xff]   ;;  %588 = vmatpush3.bf16.msra.mxu0 %v662_v1  ;;  %v667_v6 = vld [vmem:[%s890_s1 + $0xc8] sm:$0xff]   ;;  %v671_v10 = vld [vmem:[%s890_s1 + $0xd0] sm:$0xff]  }
   0x4   :  { %v664_v3 = vld [vmem:[%s890_s1 + $0x80] sm:$0xff]   ;;  %615 = vmatprep.subr.bf16.mxu1 %v663_v2  ;;  %589 = vmatprep.subr.bf16.mxu0 %v665_v4  ;;  %v668_v7 = vld [vmem:[%s890_s1 + $0x88] sm:$0xff]   ;;  %v672_v11 = vld [vmem:[%s890_s1 + $0x90] sm:$0xff]  }
   0x5   :  { %616 = vmatpush3.bf16.msra.mxu1 %v664_v3  ;;  %v673_v12 = vld [vmem:[%s890_s1 + $0x58] sm:$0xff]   ;;  %v677_v16 = vld [vmem:[%s890_s1 + $0x60] sm:$0xff]   ;;  %v681_v20 = vld [vmem:[%s890_s1 + $0x68] sm:$0xff]  }
   0x6   :  { %617 = vmatprep.subr.bf16.mxu1 %v667_v6  ;;  %v674_v13 = vld [vmem:[%s890_s1 + $0x18] sm:$0xff]   ;;  %v678_v17 = vld [vmem:[%s890_s1 + $0x20] sm:$0xff]   ;;  %v682_v21 = vld [vmem:[%s890_s1 + $0x28] sm:$0xff]  }
   0x7   :  { %590 = vmatpush3.bf16.msra.mxu0 %v666_v5  ;;  %v675_v14 = vld [vmem:[%s890_s1 + $0xd8] sm:$0xff]   ;;  %v679_v18 = vld [vmem:[%s890_s1 + $0xe0] sm:$0xff]   ;;  %v683_v22 = vld [vmem:[%s890_s1 + $0xe8] sm:$0xff]  }
   0x8   :  { %591 = vmatprep.subr.bf16.mxu0 %v669_v8  ;;  %v676_v15 = vld [vmem:[%s890_s1 + $0x98] sm:$0xff]   ;;  %v680_v19 = vld [vmem:[%s890_s1 + $0xa0] sm:$0xff]   ;;  %v684_v23 = vld [vmem:[%s890_s1 + $0xa8] sm:$0xff]  }
   0x9   :  { %618 = vmatpush3.bf16.msra.mxu1 %v668_v7  ;;  %v685_v24 = vld [vmem:[%s890_s1 + $0x70] sm:$0xff]   ;;  %v689_v28 = vld [vmem:[%s890_s1 + $0x78] sm:$0xff]   ;;  %v696_v34 = vld [vmem:[%s890_s1 + $0x100] sm:$0xff]  }
   0xa   :  { %619 = vmatprep.subr.bf16.mxu1 %v671_v10  ;;  %v686_v25 = vld [vmem:[%s890_s1 + $0x30] sm:$0xff]   ;;  %v690_v29 = vld [vmem:[%s890_s1 + $0x38] sm:$0xff]   ;;  %v699_v36 = vld [vmem:[%s891_s0 + $0xc] ss:$20 sps:$4 sm:$0xff]  }
   0xb   :  { %592 = vmatpush3.bf16.msra.mxu0 %v670_v9  ;;  %v687_v26 = vld [vmem:[%s890_s1 + $0xf0] sm:$0xff]   ;;  %v691_v30 = vld [vmem:[%s890_s1 + $0xf8] sm:$0xff]   ;;  %v700_v37 = vld [vmem:[%s890_s1 + $0x108] sm:$0xff]   ;;  %460 = vmatprep.mubr.bf16.mxu1 %v699_v36 }
   0xc   :  { %593 = vmatprep.subr.bf16.mxu0 %v673_v12  ;;  %v688_v27 = vld [vmem:[%s890_s1 + $0xb0] sm:$0xff]   ;;  %v694_v32 = vld [vmem:[%s891_s0 + $0x4] ss:$20 sps:$4 sm:$0xff]   ;;  %v697_v35 = vld [vmem:[%s891_s0 + $0x8] ss:$20 sps:$4 sm:$0xff]  }
   0xd   :  { %620 = vmatpush3.bf16.msra.mxu1 %v672_v11  ;;  %v692_v31 = vld [vmem:[%s891_s0] ss:$20 sps:$4 sm:$0xff]   ;;  %v695_v33 = vld [vmem:[%s890_s1 + $0xb8] sm:$0xff]   ;;  %411 = vmatprep.mubr.bf16.mxu0 %v694_v32  ;;  %v707_v42 = vld [vmem:[%s891_s0 + $0x30] ss:$20 sps:$4 sm:$0xff]  }
   0xe   :  { %621 = vmatprep.subr.bf16.mxu1 %v675_v14  ;;  %v701_v38 = vld [vmem:[%s891_s0 + $0x2c] ss:$20 sps:$4 sm:$0xff]   ;;  %v703_v39 = vld [vmem:[%s891_s0 + $0x28] ss:$20 sps:$4 sm:$0xff]   ;;  %v704_v40 = vld [vmem:[%s890_s1 + $0x110] sm:$0xff]  }
   0xf   :  { %594 = vmatpush3.bf16.msra.mxu0 %v674_v13  ;;  %v705_v41 = vld [vmem:[%s891_s0 + $0x34] ss:$20 sps:$4 sm:$0xff]   ;;  %v708_v43 = vld [vmem:[%s890_s1 + $0x118] sm:$0xff]   ;;  %v709_v44 = vld [vmem:[%s891_s0 + $0x10] ss:$20 sps:$4 sm:$0xff]  }
  0x10   :  { %595 = vmatprep.subr.bf16.mxu0 %v677_v16  ;;  %v710_v45 = vld [vmem:[%s891_s0 + $0x38] ss:$20 sps:$4 sm:$0xff]   ;;  %v538_v47 = vld [vmem:[%s892_s2] ss:$0 sm:$0xff] }
  0x11   :  { %622 = vmatpush3.bf16.msra.mxu1 %v676_v15 }
  0x12   :  { %623 = vmatprep.subr.bf16.mxu1 %v679_v18 }
  0x13   :  { %596 = vmatpush3.bf16.msra.mxu0 %v678_v17 }
  0x14   :  { %597 = vmatprep.subr.bf16.mxu0 %v681_v20 }
  0x15   :  { %624 = vmatpush3.bf16.msra.mxu1 %v680_v19 }
  0x16   :  { %625 = vmatprep.subr.bf16.mxu1 %v683_v22 }
  0x17   :  { %598 = vmatpush3.bf16.msra.mxu0 %v682_v21 }
  0x18   :  { %599 = vmatprep.subr.bf16.mxu0 %v685_v24 }
  0x19   :  { %626 = vmatpush3.bf16.msra.mxu1 %v684_v23 }
  0x1a   :  { %627 = vmatprep.subr.bf16.mxu1 %v687_v26 }
  0x1b   :  { %600 = vmatpush3.bf16.msra.mxu0 %v686_v25 }
  0x1c   :  { %601 = vmatprep.subr.bf16.mxu0 %v689_v28 }
  0x1d   :  { %628 = vmatpush3.bf16.msra.mxu1 %v688_v27 }
  0x1e   :  { %629 = vmatprep.subr.bf16.mxu1 %v691_v30 }
  0x1f   :  { %602 = vmatpush3.bf16.msra.mxu0 %v690_v29 }
  0x20   :  { %649 = vmatprep.subr.bf16.mxu0 %v696_v34 }
  0x21   :  { %630 = vmatpush3.bf16.msra.mxu1 %v695_v33 }
  0x22   :  { %412 = vmatmul.mubr.bf16.vlgmr.msra.gmra.mrb[0].mxu0 %v692_v31 }
  0x23   :  { %650 = vmatpush3.bf16.msra.mxu0 %v696_v34  ;;  %419 = vmatprep.mubr.bf16.mxu0 %v701_v38 }
  0x24   :  { %461 = vmatmul.mubr.bf16.vlgmr.msra.gmra.mrb[0].mxu1 %v697_v35  ;;  %651 = vmatprep.subr.bf16.mxu0 %v700_v37 }
  0x25   :  { %468 = vmatprep.mubr.bf16.mxu1 %v705_v41 }
  0x27   :  { %652 = vmatpush3.bf16.msra.mxu0 %v700_v37 }
  0x28   :  { %653 = vmatprep.subr.bf16.mxu0 %v704_v40 }
  0x2a   :  { %420 = vmatmul.mubr.bf16.gmra.mrb[4].mxu0 %v703_v39 }
  0x2b   :  { %657 = vmatprep.mubr.msk.bf16.mxu0 %vm372_vm0, %v709_v44  ;;  %654 = vmatpush3.bf16.msra.mxu0 %v704_v40 }
  0x2c   :  { %469 = vmatmul.mubr.bf16.gmra.mrb[4].mxu1 %v707_v42  ;;  %655 = vmatprep.subr.bf16.mxu0 %v708_v43 }
  0x2f   :  { %656 = vmatpush3.bf16.msra.mxu0 %v708_v43 }
  0x32   :  { %658 = vmatmul.mubr.msk.bf16.vlgmr.msra.gmra.mrb[8].mxu0 %vm372_vm0, %v710_v45 }
  0xf5   :  { %v603_v46 = vpop.f32.mrb[0].mxu0 }
  0xf6   :  { %v604_v48 = vpop.f32.mrb[1].mxu0 }
  0xf7   :  { %v605_v49 = vadd.f32 %v604_v48, %v603_v46  ;;  %v606_v50 = vpop.f32.mrb[2].mxu0  ;;  %v631_v51 = vpop.f32.mrb[0].mxu1 }
  0xf8   :  { %v607_v52 = vpop.f32.mrb[3].mxu0  ;;  %v632_v55 = vpop.f32.mrb[1].mxu1 }
  0xf9   :  { %v414_v53 = vadd.f32 %v605_v49, %v538_v47  ;;  %v608_v54 = vadd.f32 %v607_v52, %v606_v50  ;;  %v633_v56 = vadd.f32 %v632_v55, %v631_v51  ;;  %v634_v57 = vpop.f32.mrb[2].mxu1 }
  0xfa   :  { %v635_v59 = vpop.f32.mrb[3].mxu1 }
  0xfb   :  { %v417_v58 = vadd.f32 %v608_v54, %v538_v47  ;;  %v636_v60 = vadd.f32 %v635_v59, %v634_v57  ;;  %v463_v61 = vadd.f32 %v633_v56, %v414_v53 }
  0xfd   :  { %v609_v62 = vpop.f32.mrb[4].mxu0  ;;  %v466_v0 = vadd.f32 %v636_v60, %v417_v58 }
  0xfe   :  { %v610_v63 = vpop.f32.mrb[5].mxu0 }
  0xff   :  { %v611_v1 = vadd.f32 %v610_v63, %v609_v62  ;;  %v612_v2 = vpop.f32.mrb[6].mxu0  ;;  %v637_v3 = vpop.f32.mrb[4].mxu1 }
 0x100   :  { %v613_v4 = vpop.f32.mrb[7].mxu0  ;;  %v638_v7 = vpop.f32.mrb[5].mxu1 }
 0x101   :  { %v422_v5 = vadd.f32 %v611_v1, %v538_v47  ;;  %v614_v6 = vadd.f32 %v613_v4, %v612_v2  ;;  %v639_v8 = vadd.f32 %v638_v7, %v637_v3  ;;  %v640_v9 = vpop.f32.mrb[6].mxu1 }
 0x102   :  { %v641_v11 = vpop.f32.mrb[7].mxu1 }
 0x103   :  { %v425_v10 = vadd.f32 %v614_v6, %v538_v47  ;;  %v642_v12 = vadd.f32 %v641_v11, %v640_v9  ;;  %v471_v13 = vadd.f32 %v639_v8, %v422_v5 }
 0x105   :  { %v659_v14 = vpop.f32.mrb[8].mxu0  ;;  %v474_v15 = vadd.f32 %v642_v12, %v425_v10 }
 0x106   :  { %v520_v16 = vadd.f32 %v659_v14, %v471_v13  ;;  %v511_v17 = vpop.f32.mrb[9].mxu0 }
 0x107   :  { %v512_v18 = vadd.f32 %v511_v17, %v463_v61  ;;  %v660_v19 = vpop.f32.mrb[10].mxu0 }
 0x108   :  { %v528_v20 = vmax.f32 %v520_v16, 0.0  ;;  %v523_v21 = vadd.f32 %v660_v19, %v474_v15  ;;  %v514_v22 = vpop.f32.mrb[11].mxu0 }
 0x109   :  { %v526_v23 = vmax.f32 %v512_v18, 0.0  ;;  %v515_v24 = vadd.f32 %v514_v22, %v466_v0 }
 0x10a   :  { %532 = vst.msk [vmem:[%s893_s3 + $0x10] sm:$0xff] %vm372_vm0, %v528_v20  ;;  %v529_v25 = vmax.f32 %v523_v21, 0.0 }
 0x10b   :  { %530 = vst.msk [vmem:[%s893_s3] sm:$0xff] %vm372_vm0, %v526_v23  ;;  %v527_v26 = vmax.f32 %v515_v24, 0.0 }
 0x10c   :  { %533 = vst.msk [vmem:[%s893_s3 + $0x18] sm:$0xff] %vm372_vm0, %v529_v25 }
 0x10d   :  { %531 = vst.msk [vmem:[%s893_s3 + $0x8] sm:$0xff] %vm372_vm0, %v527_v26 }

// kernel: encoder_forward.11
= control target key start
LH: loop header
LB: loop body
LE: loop exit
PB: predicated region body
PF: predicated region fallthrough
CT: control target
= control target key end

     0   :  { %vm375_vm0 = vcmask 523264   ;;  %s918_s1 = inlined_call_operand.vmem [shape: bf16[576,64], index: 1, kind: input, shape index: {}]   ;;  %s919_s0 = inlined_call_operand.vmem [shape: bf16[32,576], index: 0, kind: input, shape index: {}]   ;;  %s920_s2 = inlined_call_operand.vmem [shape: f32[1,64], index: 2, kind: input, shape index: {}]   ;;  %s921_s3 = inlined_call_operand.vmem [shape: f32[32,64], index: 3, kind: input, shape index: {}]   ;;  %s922_s4 = inlined_call_operand.vmem [shape: f32[32,64], index: 4, kind: output, shape index: {}]  }
   0x1   :  { %v672_v0 = vld [vmem:[%s918_s1 + $0x40] sm:$0xff]   ;;  %v676_v4 = vld [vmem:[%s918_s1 + $0x48] sm:$0xff]   ;;  %v680_v8 = vld [vmem:[%s918_s1 + $0x50] sm:$0xff]  }
   0x2   :  { %v673_v1 = vld [vmem:[%s918_s1] sm:$0xff]   ;;  %598 = vmatprep.subr.bf16.mxu0 %v672_v0  ;;  %v677_v5 = vld [vmem:[%s918_s1 + $0x8] sm:$0xff]   ;;  %v681_v9 = vld [vmem:[%s918_s1 + $0x10] sm:$0xff]  }
   0x3   :  { %v674_v2 = vld [vmem:[%s918_s1 + $0xc0] sm:$0xff]   ;;  %599 = vmatpush3.bf16.msra.mxu0 %v673_v1  ;;  %v678_v6 = vld [vmem:[%s918_s1 + $0xc8] sm:$0xff]   ;;  %v682_v10 = vld [vmem:[%s918_s1 + $0xd0] sm:$0xff]  }
   0x4   :  { %v675_v3 = vld [vmem:[%s918_s1 + $0x80] sm:$0xff]   ;;  %626 = vmatprep.subr.bf16.mxu1 %v674_v2  ;;  %600 = vmatprep.subr.bf16.mxu0 %v676_v4  ;;  %v679_v7 = vld [vmem:[%s918_s1 + $0x88] sm:$0xff]   ;;  %v683_v11 = vld [vmem:[%s918_s1 + $0x90] sm:$0xff]  }
   0x5   :  { %627 = vmatpush3.bf16.msra.mxu1 %v675_v3  ;;  %v684_v12 = vld [vmem:[%s918_s1 + $0x58] sm:$0xff]   ;;  %v688_v16 = vld [vmem:[%s918_s1 + $0x60] sm:$0xff]   ;;  %v692_v20 = vld [vmem:[%s918_s1 + $0x68] sm:$0xff]  }
   0x6   :  { %628 = vmatprep.subr.bf16.mxu1 %v678_v6  ;;  %v685_v13 = vld [vmem:[%s918_s1 + $0x18] sm:$0xff]   ;;  %v689_v17 = vld [vmem:[%s918_s1 + $0x20] sm:$0xff]   ;;  %v693_v21 = vld [vmem:[%s918_s1 + $0x28] sm:$0xff]  }
   0x7   :  { %601 = vmatpush3.bf16.msra.mxu0 %v677_v5  ;;  %v686_v14 = vld [vmem:[%s918_s1 + $0xd8] sm:$0xff]   ;;  %v690_v18 = vld [vmem:[%s918_s1 + $0xe0] sm:$0xff]   ;;  %v694_v22 = vld [vmem:[%s918_s1 + $0xe8] sm:$0xff]  }
   0x8   :  { %602 = vmatprep.subr.bf16.mxu0 %v680_v8  ;;  %v687_v15 = vld [vmem:[%s918_s1 + $0x98] sm:$0xff]   ;;  %v691_v19 = vld [vmem:[%s918_s1 + $0xa0] sm:$0xff]   ;;  %v695_v23 = vld [vmem:[%s918_s1 + $0xa8] sm:$0xff]  }
   0x9   :  { %629 = vmatpush3.bf16.msra.mxu1 %v679_v7  ;;  %v696_v24 = vld [vmem:[%s918_s1 + $0x70] sm:$0xff]   ;;  %v700_v28 = vld [vmem:[%s918_s1 + $0x78] sm:$0xff]   ;;  %v707_v34 = vld [vmem:[%s918_s1 + $0x100] sm:$0xff]  }
   0xa   :  { %630 = vmatprep.subr.bf16.mxu1 %v682_v10  ;;  %v697_v25 = vld [vmem:[%s918_s1 + $0x30] sm:$0xff]   ;;  %v701_v29 = vld [vmem:[%s918_s1 + $0x38] sm:$0xff]   ;;  %v710_v36 = vld [vmem:[%s919_s0 + $0xc] ss:$20 sps:$4 sm:$0xff]  }
   0xb   :  { %603 = vmatpush3.bf16.msra.mxu0 %v681_v9  ;;  %v698_v26 = vld [vmem:[%s918_s1 + $0xf0] sm:$0xff]   ;;  %v702_v30 = vld [vmem:[%s918_s1 + $0xf8] sm:$0xff]   ;;  %v711_v37 = vld [vmem:[%s918_s1 + $0x108] sm:$0xff]   ;;  %463 = vmatprep.mubr.bf16.mxu1 %v710_v36 }
   0xc   :  { %604 = vmatprep.subr.bf16.mxu0 %v684_v12  ;;  %v699_v27 = vld [vmem:[%s918_s1 + $0xb0] sm:$0xff]   ;;  %v705_v32 = vld [vmem:[%s919_s0 + $0x4] ss:$20 sps:$4 sm:$0xff]   ;;  %v708_v35 = vld [vmem:[%s919_s0 + $0x8] ss:$20 sps:$4 sm:$0xff]  }
   0xd   :  { %631 = vmatpush3.bf16.msra.mxu1 %v683_v11  ;;  %v703_v31 = vld [vmem:[%s919_s0] ss:$20 sps:$4 sm:$0xff]   ;;  %v706_v33 = vld [vmem:[%s918_s1 + $0xb8] sm:$0xff]   ;;  %414 = vmatprep.mubr.bf16.mxu0 %v705_v32  ;;  %v718_v42 = vld [vmem:[%s919_s0 + $0x30] ss:$20 sps:$4 sm:$0xff]  }
   0xe   :  { %632 = vmatprep.subr.bf16.mxu1 %v686_v14  ;;  %v712_v38 = vld [vmem:[%s919_s0 + $0x2c] ss:$20 sps:$4 sm:$0xff]   ;;  %v714_v39 = vld [vmem:[%s919_s0 + $0x28] ss:$20 sps:$4 sm:$0xff]   ;;  %v715_v40 = vld [vmem:[%s918_s1 + $0x110] sm:$0xff]  }
   0xf   :  { %605 = vmatpush3.bf16.msra.mxu0 %v685_v13  ;;  %v716_v41 = vld [vmem:[%s919_s0 + $0x34] ss:$20 sps:$4 sm:$0xff]   ;;  %v719_v43 = vld [vmem:[%s918_s1 + $0x118] sm:$0xff]   ;;  %v720_v44 = vld [vmem:[%s919_s0 + $0x10] ss:$20 sps:$4 sm:$0xff]  }
  0x10   :  { %606 = vmatprep.subr.bf16.mxu0 %v688_v16  ;;  %v721_v45 = vld [vmem:[%s919_s0 + $0x38] ss:$20 sps:$4 sm:$0xff]   ;;  %v549_v47 = vld [vmem:[%s920_s2] ss:$0 sm:$0xff] }
  0x11   :  { %633 = vmatpush3.bf16.msra.mxu1 %v687_v15  ;;  %v531_v15 = vld [vmem:[%s921_s3 + $0x10] sm:$0xff] }
  0x12   :  { %634 = vmatprep.subr.bf16.mxu1 %v690_v18 }
  0x13   :  { %607 = vmatpush3.bf16.msra.mxu0 %v689_v17 }
  0x14   :  { %608 = vmatprep.subr.bf16.mxu0 %v692_v20 }
  0x15   :  { %635 = vmatpush3.bf16.msra.mxu1 %v691_v19  ;;  %v529_v19 = vld [vmem:[%s921_s3] sm:$0xff] }
  0x16   :  { %636 = vmatprep.subr.bf16.mxu1 %v694_v22  ;;  %v532_v22 = vld [vmem:[%s921_s3 + $0x18] sm:$0xff] }
  0x17   :  { %609 = vmatpush3.bf16.msra.mxu0 %v693_v21 }
  0x18   :  { %610 = vmatprep.subr.bf16.mxu0 %v696_v24 }
  0x19   :  { %637 = vmatpush3.bf16.msra.mxu1 %v695_v23 }
  0x1a   :  { %638 = vmatprep.subr.bf16.mxu1 %v698_v26  ;;  %v530_v26 = vld [vmem:[%s921_s3 + $0x8] sm:$0xff] }
  0x1b   :  { %611 = vmatpush3.bf16.msra.mxu0 %v697_v25 }
  0x1c   :  { %612 = vmatprep.subr.bf16.mxu0 %v700_v28 }
  0x1d   :  { %639 = vmatpush3.bf16.msra.mxu1 %v699_v27 }
  0x1e   :  { %640 = vmatprep.subr.bf16.mxu1 %v702_v30 }
  0x1f   :  { %613 = vmatpush3.bf16.msra.mxu0 %v701_v29 }
  0x20   :  { %660 = vmatprep.subr.bf16.mxu0 %v707_v34 }
  0x21   :  { %641 = vmatpush3.bf16.msra.mxu1 %v706_v33 }
  0x22   :  { %415 = vmatmul.mubr.bf16.vlgmr.msra.gmra.mrb[0].mxu0 %v703_v31 }
  0x23   :  { %661 = vmatpush3.bf16.msra.mxu0 %v707_v34  ;;  %422 = vmatprep.mubr.bf16.mxu0 %v712_v38 }
  0x24   :  { %464 = vmatmul.mubr.bf16.vlgmr.msra.gmra.mrb[0].mxu1 %v708_v35  ;;  %662 = vmatprep.subr.bf16.mxu0 %v711_v37 }
  0x25   :  { %471 = vmatprep.mubr.bf16.mxu1 %v716_v41 }
  0x27   :  { %663 = vmatpush3.bf16.msra.mxu0 %v711_v37 }
  0x28   :  { %664 = vmatprep.subr.bf16.mxu0 %v715_v40 }
  0x2a   :  { %423 = vmatmul.mubr.bf16.gmra.mrb[4].mxu0 %v714_v39 }
  0x2b   :  { %668 = vmatprep.mubr.msk.bf16.mxu0 %vm375_vm0, %v720_v44  ;;  %665 = vmatpush3.bf16.msra.mxu0 %v715_v40 }
  0x2c   :  { %472 = vmatmul.mubr.bf16.gmra.mrb[4].mxu1 %v718_v42  ;;  %666 = vmatprep.subr.bf16.mxu0 %v719_v43 }
  0x2f   :  { %667 = vmatpush3.bf16.msra.mxu0 %v719_v43 }
  0x32   :  { %669 = vmatmul.mubr.msk.bf16.vlgmr.msra.gmra.mrb[8].mxu0 %vm375_vm0, %v721_v45 }
  0xf5   :  { %v614_v46 = vpop.f32.mrb[0].mxu0 }
  0xf6   :  { %v615_v48 = vpop.f32.mrb[1].mxu0 }
  0xf7   :  { %v616_v49 = vadd.f32 %v615_v48, %v614_v46  ;;  %v617_v50 = vpop.f32.mrb[2].mxu0  ;;  %v642_v51 = vpop.f32.mrb[0].mxu1 }
  0xf8   :  { %v618_v52 = vpop.f32.mrb[3].mxu0  ;;  %v643_v55 = vpop.f32.mrb[1].mxu1 }
  0xf9   :  { %v417_v53 = vadd.f32 %v616_v49, %v549_v47  ;;  %v619_v54 = vadd.f32 %v618_v52, %v617_v50  ;;  %v644_v56 = vadd.f32 %v643_v55, %v642_v51  ;;  %v645_v57 = vpop.f32.mrb[2].mxu1 }
  0xfa   :  { %v646_v59 = vpop.f32.mrb[3].mxu1 }
  0xfb   :  { %v420_v58 = vadd.f32 %v619_v54, %v549_v47  ;;  %v647_v60 = vadd.f32 %v646_v59, %v645_v57  ;;  %v466_v61 = vadd.f32 %v644_v56, %v417_v53 }
  0xfd   :  { %v620_v62 = vpop.f32.mrb[4].mxu0  ;;  %v469_v0 = vadd.f32 %v647_v60, %v420_v58 }
  0xfe   :  { %v621_v63 = vpop.f32.mrb[5].mxu0 }
  0xff   :  { %v622_v1 = vadd.f32 %v621_v63, %v620_v62  ;;  %v623_v2 = vpop.f32.mrb[6].mxu0  ;;  %v648_v3 = vpop.f32.mrb[4].mxu1 }
 0x100   :  { %v624_v4 = vpop.f32.mrb[7].mxu0  ;;  %v649_v7 = vpop.f32.mrb[5].mxu1 }
 0x101   :  { %v425_v5 = vadd.f32 %v622_v1, %v549_v47  ;;  %v625_v6 = vadd.f32 %v624_v4, %v623_v2  ;;  %v650_v8 = vadd.f32 %v649_v7, %v648_v3  ;;  %v651_v9 = vpop.f32.mrb[6].mxu1 }
 0x102   :  { %v652_v11 = vpop.f32.mrb[7].mxu1 }
 0x103   :  { %v428_v10 = vadd.f32 %v625_v6, %v549_v47  ;;  %v653_v12 = vadd.f32 %v652_v11, %v651_v9  ;;  %v474_v13 = vadd.f32 %v650_v8, %v425_v5 }
 0x105   :  { %v670_v14 = vpop.f32.mrb[8].mxu0  ;;  %v477_v16 = vadd.f32 %v653_v12, %v428_v10 }
 0x106   :  { %v523_v17 = vadd.f32 %v670_v14, %v474_v13  ;;  %v514_v18 = vpop.f32.mrb[9].mxu0 }
 0x107   :  { %v515_v20 = vadd.f32 %v514_v18, %v466_v61  ;;  %v671_v21 = vpop.f32.mrb[10].mxu0 }
 0x108   :  { %v535_v23 = vadd.f32 %v531_v15, %v523_v17  ;;  %v526_v24 = vadd.f32 %v671_v21, %v477_v16  ;;  %v517_v25 = vpop.f32.mrb[11].mxu0 }
 0x109   :  { %v533_v27 = vadd.f32 %v529_v19, %v515_v20  ;;  %v518_v28 = vadd.f32 %v517_v25, %v469_v0 }
 0x10a   :  { %v539_v29 = vmax.f32 %v535_v23, 0.0  ;;  %v536_v30 = vadd.f32 %v532_v22, %v526_v24 }
 0x10b   :  { %v537_v31 = vmax.f32 %v533_v27, 0.0  ;;  %v534_v32 = vadd.f32 %v530_v26, %v518_v28 }
 0x10c   :  { %543 = vst.msk [vmem:[%s922_s4 + $0x10] sm:$0xff] %vm375_vm0, %v539_v29  ;;  %v540_v33 = vmax.f32 %v536_v30, 0.0 }
 0x10d   :  { %541 = vst.msk [vmem:[%s922_s4] sm:$0xff] %vm375_vm0, %v537_v31  ;;  %v538_v34 = vmax.f32 %v534_v32, 0.0 }
 0x10e   :  { %544 = vst.msk [vmem:[%s922_s4 + $0x18] sm:$0xff] %vm375_vm0, %v540_v33 }
 0x10f   :  { %542 = vst.msk [vmem:[%s922_s4 + $0x8] sm:$0xff] %vm375_vm0, %v538_v34 }

// kernel: encoder_forward.13
= control target key start
LH: loop header
LB: loop body
LE: loop exit
PB: predicated region body
PF: predicated region fallthrough
CT: control target
= control target key end

     0   :  { %vm376_vm0 = vcmask 523264   ;;  %s961_s0 = inlined_call_operand.vmem [shape: bf16[32,576], index: 0, kind: input, shape index: {}]   ;;  %s962_s1 = inlined_call_operand.vmem [shape: bf16[576,64], index: 1, kind: input, shape index: {}]   ;;  %s963_s2 = inlined_call_operand.vmem [shape: f32[1,64], index: 2, kind: input, shape index: {}]   ;;  %s964_s3 = inlined_call_operand.vmem [shape: f32[32,64], index: 3, kind: input, shape index: {}]   ;;  %s965_s4 = inlined_call_operand.hbm [shape: f32[32,64], index: 4, kind: output, shape index: {}]  }
   0x1   :  { %v688_v0 = vld [vmem:[%s962_s1 + $0x40] sm:$0xff]   ;;  %v692_v4 = vld [vmem:[%s962_s1 + $0x48] sm:$0xff]   ;;  %v696_v8 = vld [vmem:[%s962_s1 + $0x50] sm:$0xff]  }
   0x2   :  { %v689_v1 = vld [vmem:[%s962_s1] sm:$0xff]   ;;  %611 = vmatprep.subr.bf16.mxu0 %v688_v0  ;;  %v693_v5 = vld [vmem:[%s962_s1 + $0x8] sm:$0xff]   ;;  %v697_v9 = vld [vmem:[%s962_s1 + $0x10] sm:$0xff]  }
   0x3   :  { %v690_v2 = vld [vmem:[%s962_s1 + $0xc0] sm:$0xff]   ;;  %612 = vmatpush3.bf16.msra.mxu0 %v689_v1  ;;  %v694_v6 = vld [vmem:[%s962_s1 + $0xc8] sm:$0xff]   ;;  %v698_v10 = vld [vmem:[%s962_s1 + $0xd0] sm:$0xff]  }
   0x4   :  { %v691_v3 = vld [vmem:[%s962_s1 + $0x80] sm:$0xff]   ;;  %639 = vmatprep.subr.bf16.mxu1 %v690_v2  ;;  %613 = vmatprep.subr.bf16.mxu0 %v692_v4  ;;  %v695_v7 = vld [vmem:[%s962_s1 + $0x88] sm:$0xff]   ;;  %v699_v11 = vld [vmem:[%s962_s1 + $0x90] sm:$0xff]  }
   0x5   :  { %640 = vmatpush3.bf16.msra.mxu1 %v691_v3  ;;  %v700_v12 = vld [vmem:[%s962_s1 + $0x58] sm:$0xff]   ;;  %v704_v16 = vld [vmem:[%s962_s1 + $0x60] sm:$0xff]   ;;  %v708_v20 = vld [vmem:[%s962_s1 + $0x68] sm:$0xff]  }
   0x6   :  { %641 = vmatprep.subr.bf16.mxu1 %v694_v6  ;;  %v701_v13 = vld [vmem:[%s962_s1 + $0x18] sm:$0xff]   ;;  %v705_v17 = vld [vmem:[%s962_s1 + $0x20] sm:$0xff]   ;;  %v709_v21 = vld [vmem:[%s962_s1 + $0x28] sm:$0xff]  }
   0x7   :  { %614 = vmatpush3.bf16.msra.mxu0 %v693_v5  ;;  %v702_v14 = vld [vmem:[%s962_s1 + $0xd8] sm:$0xff]   ;;  %v706_v18 = vld [vmem:[%s962_s1 + $0xe0] sm:$0xff]   ;;  %v710_v22 = vld [vmem:[%s962_s1 + $0xe8] sm:$0xff]  }
   0x8   :  { %615 = vmatprep.subr.bf16.mxu0 %v696_v8  ;;  %v703_v15 = vld [vmem:[%s962_s1 + $0x98] sm:$0xff]   ;;  %v707_v19 = vld [vmem:[%s962_s1 + $0xa0] sm:$0xff]   ;;  %v711_v23 = vld [vmem:[%s962_s1 + $0xa8] sm:$0xff]  }
   0x9   :  { %642 = vmatpush3.bf16.msra.mxu1 %v695_v7  ;;  %v712_v24 = vld [vmem:[%s962_s1 + $0x70] sm:$0xff]   ;;  %v716_v28 = vld [vmem:[%s962_s1 + $0x78] sm:$0xff]   ;;  %v723_v34 = vld [vmem:[%s962_s1 + $0x100] sm:$0xff]  }
   0xa   :  { %643 = vmatprep.subr.bf16.mxu1 %v698_v10  ;;  %v713_v25 = vld [vmem:[%s962_s1 + $0x30] sm:$0xff]   ;;  %v717_v29 = vld [vmem:[%s962_s1 + $0x38] sm:$0xff]   ;;  %v726_v36 = vld [vmem:[%s961_s0 + $0xc] ss:$20 sps:$4 sm:$0xff]  }
   0xb   :  { %616 = vmatpush3.bf16.msra.mxu0 %v697_v9  ;;  %v714_v26 = vld [vmem:[%s962_s1 + $0xf0] sm:$0xff]   ;;  %v718_v30 = vld [vmem:[%s962_s1 + $0xf8] sm:$0xff]   ;;  %v727_v37 = vld [vmem:[%s962_s1 + $0x108] sm:$0xff]   ;;  %464 = vmatprep.mubr.bf16.mxu1 %v726_v36 }
   0xc   :  { %617 = vmatprep.subr.bf16.mxu0 %v700_v12  ;;  %v715_v27 = vld [vmem:[%s962_s1 + $0xb0] sm:$0xff]   ;;  %v721_v32 = vld [vmem:[%s961_s0 + $0x4] ss:$20 sps:$4 sm:$0xff]   ;;  %v724_v35 = vld [vmem:[%s961_s0 + $0x8] ss:$20 sps:$4 sm:$0xff]  }
   0xd   :  { %644 = vmatpush3.bf16.msra.mxu1 %v699_v11  ;;  %v719_v31 = vld [vmem:[%s961_s0] ss:$20 sps:$4 sm:$0xff]   ;;  %v722_v33 = vld [vmem:[%s962_s1 + $0xb8] sm:$0xff]   ;;  %415 = vmatprep.mubr.bf16.mxu0 %v721_v32  ;;  %v734_v42 = vld [vmem:[%s961_s0 + $0x30] ss:$20 sps:$4 sm:$0xff]  }
   0xe   :  { %645 = vmatprep.subr.bf16.mxu1 %v702_v14  ;;  %v728_v38 = vld [vmem:[%s961_s0 + $0x2c] ss:$20 sps:$4 sm:$0xff]   ;;  %v730_v39 = vld [vmem:[%s961_s0 + $0x28] ss:$20 sps:$4 sm:$0xff]   ;;  %v731_v40 = vld [vmem:[%s962_s1 + $0x110] sm:$0xff]  }
   0xf   :  { %618 = vmatpush3.bf16.msra.mxu0 %v701_v13  ;;  %v732_v41 = vld [vmem:[%s961_s0 + $0x34] ss:$20 sps:$4 sm:$0xff]   ;;  %v735_v43 = vld [vmem:[%s962_s1 + $0x118] sm:$0xff]   ;;  %v736_v44 = vld [vmem:[%s961_s0 + $0x10] ss:$20 sps:$4 sm:$0xff]  }
  0x10   :  { %619 = vmatprep.subr.bf16.mxu0 %v704_v16 }
  0x11   :  { %646 = vmatpush3.bf16.msra.mxu1 %v703_v15 }
  0x12   :  { %647 = vmatprep.subr.bf16.mxu1 %v706_v18 }
  0x13   :  { %620 = vmatpush3.bf16.msra.mxu0 %v705_v17 }
  0x14   :  { %621 = vmatprep.subr.bf16.mxu0 %v708_v20 }
  0x15   :  { %648 = vmatpush3.bf16.msra.mxu1 %v707_v19 }
  0x16   :  { %649 = vmatprep.subr.bf16.mxu1 %v710_v22 }
  0x17   :  { %622 = vmatpush3.bf16.msra.mxu0 %v709_v21 }
  0x18   :  { %623 = vmatprep.subr.bf16.mxu0 %v712_v24 }
  0x19   :  { %650 = vmatpush3.bf16.msra.mxu1 %v711_v23 }
  0x1a   :  { %651 = vmatprep.subr.bf16.mxu1 %v714_v26 }
  0x1b   :  { %624 = vmatpush3.bf16.msra.mxu0 %v713_v25 }
  0x1c   :  { %625 = vmatprep.subr.bf16.mxu0 %v716_v28 }
  0x1d   :  { %652 = vmatpush3.bf16.msra.mxu1 %v715_v27 }
  0x1e   :  { %653 = vmatprep.subr.bf16.mxu1 %v718_v30 }
  0x1f   :  { %626 = vmatpush3.bf16.msra.mxu0 %v717_v29 }
  0x20   :  { %673 = vmatprep.subr.bf16.mxu0 %v723_v34 }
  0x21   :  { %654 = vmatpush3.bf16.msra.mxu1 %v722_v33 }
  0x22   :  { %416 = vmatmul.mubr.bf16.vlgmr.msra.gmra.mrb[0].mxu0 %v719_v31 }
  0x23   :  { %674 = vmatpush3.bf16.msra.mxu0 %v723_v34  ;;  %423 = vmatprep.mubr.bf16.mxu0 %v728_v38 }
  0x24   :  { %465 = vmatmul.mubr.bf16.vlgmr.msra.gmra.mrb[0].mxu1 %v724_v35  ;;  %675 = vmatprep.subr.bf16.mxu0 %v727_v37 }
  0x25   :  { %472 = vmatprep.mubr.bf16.mxu1 %v732_v41 }
  0x27   :  { %676 = vmatpush3.bf16.msra.mxu0 %v727_v37 }
  0x28   :  { %677 = vmatprep.subr.bf16.mxu0 %v731_v40 }
  0x2a   :  { %424 = vmatmul.mubr.bf16.gmra.mrb[4].mxu0 %v730_v39 }
  0x2b   :  { %9 = vsyncpa [#allocation3], 0  ;;  %681 = vmatprep.mubr.msk.bf16.mxu0 %vm376_vm0, %v736_v44  ;;  %678 = vmatpush3.bf16.msra.mxu0 %v731_v40  ;;  %v737_v45 = vld [vmem:[%s961_s0 + $0x38] ss:$20 sps:$4 sm:$0xff]   ;;  %v562_v47 = vld [vmem:[%s963_s2] ss:$0 sm:$0xff] }
  0x2c   :  { %473 = vmatmul.mubr.bf16.gmra.mrb[4].mxu1 %v734_v42  ;;  %679 = vmatprep.subr.bf16.mxu0 %v735_v43  ;;  %v532_v15 = vld [vmem:[%s964_s3 + $0x10] sm:$0xff]  ;;  %v530_v19 = vld [vmem:[%s964_s3] sm:$0xff]  ;;  %v533_v22 = vld [vmem:[%s964_s3 + $0x18] sm:$0xff]  ;;  %s762_s10 = smov [#allocation2]  }
  0x2d   :  { %v531_v26 = vld [vmem:[%s964_s3 + $0x8] sm:$0xff]  ;;  %s551_s11 = sshll.u32 %s762_s10, 4  ;;  %s552_s11 = int_to_ptr.vmem [resolvable:$true] %s551_s11 }
  0x2e   :  { %s738_s3 = scalar_lea.vmem %s552_s11, 512  ;;  %p743_p1 = scmp.lt.s32.totalorder %s552_s11, %s552_s11 }
  0x2f   :  { %680 = vmatpush3.bf16.msra.mxu0 %v735_v43  ;;  %p739_p0 = scmp.ne.s32.totalorder %s552_s11, %s738_s3  ;;  %p744_p2 = scmp.lt.s32.totalorder %s738_s3, %s738_s3 }
  0x31   :  { %p745_p3 = por %p744_p2, %p743_p1 }
  0x32   :  { %682 = vmatmul.mubr.msk.bf16.vlgmr.msra.gmra.mrb[8].mxu0 %vm376_vm0, %v737_v45 }
  0x33   :  { %p746_p4 = pnand %p745_p3, %p739_p0 }
  0xf5   :  { %v627_v46 = vpop.f32.mrb[0].mxu0 }
  0xf6   :  { %v628_v48 = vpop.f32.mrb[1].mxu0 }
  0xf7   :  { %v629_v49 = vadd.f32 %v628_v48, %v627_v46  ;;  %v630_v50 = vpop.f32.mrb[2].mxu0  ;;  %v655_v51 = vpop.f32.mrb[0].mxu1 }
  0xf8   :  { %v631_v52 = vpop.f32.mrb[3].mxu0  ;;  %v656_v55 = vpop.f32.mrb[1].mxu1 }
  0xf9   :  { %v418_v53 = vadd.f32 %v629_v49, %v562_v47  ;;  %v632_v54 = vadd.f32 %v631_v52, %v630_v50  ;;  %v657_v56 = vadd.f32 %v656_v55, %v655_v51  ;;  %v658_v57 = vpop.f32.mrb[2].mxu1 }
  0xfa   :  { %v659_v59 = vpop.f32.mrb[3].mxu1 }
  0xfb   :  { %v421_v58 = vadd.f32 %v632_v54, %v562_v47  ;;  %v660_v60 = vadd.f32 %v659_v59, %v658_v57  ;;  %v467_v61 = vadd.f32 %v657_v56, %v418_v53 }
  0xfd   :  { %v633_v62 = vpop.f32.mrb[4].mxu0  ;;  %v470_v0 = vadd.f32 %v660_v60, %v421_v58 }
  0xfe   :  { %v634_v63 = vpop.f32.mrb[5].mxu0 }
  0xff   :  { %v635_v1 = vadd.f32 %v634_v63, %v633_v62  ;;  %v636_v2 = vpop.f32.mrb[6].mxu0  ;;  %v661_v3 = vpop.f32.mrb[4].mxu1 }
 0x100   :  { %v637_v4 = vpop.f32.mrb[7].mxu0  ;;  %v662_v7 = vpop.f32.mrb[5].mxu1 }
 0x101   :  { %v426_v5 = vadd.f32 %v635_v1, %v562_v47  ;;  %v638_v6 = vadd.f32 %v637_v4, %v636_v2  ;;  %v663_v8 = vadd.f32 %v662_v7, %v661_v3  ;;  %v664_v9 = vpop.f32.mrb[6].mxu1 }
 0x102   :  { %v665_v11 = vpop.f32.mrb[7].mxu1 }
 0x103   :  { %v429_v10 = vadd.f32 %v638_v6, %v562_v47  ;;  %v666_v12 = vadd.f32 %v665_v11, %v664_v9  ;;  %v475_v13 = vadd.f32 %v663_v8, %v426_v5 }
 0x105   :  { %v683_v14 = vpop.f32.mrb[8].mxu0  ;;  %v478_v16 = vadd.f32 %v666_v12, %v429_v10 }
 0x106   :  { %v524_v17 = vadd.f32 %v683_v14, %v475_v13  ;;  %v515_v18 = vpop.f32.mrb[9].mxu0 }
 0x107   :  { %v516_v20 = vadd.f32 %v515_v18, %v467_v61  ;;  %v684_v21 = vpop.f32.mrb[10].mxu0 }
 0x108   :  { %v536_v23 = vadd.f32 %v532_v15, %v524_v17  ;;  %v527_v24 = vadd.f32 %v684_v21, %v478_v16  ;;  %v518_v25 = vpop.f32.mrb[11].mxu0 }
 0x109   :  { %v534_v27 = vadd.f32 %v530_v19, %v516_v20  ;;  %v519_v28 = vadd.f32 %v518_v25, %v470_v0 }
 0x10a   :  { %v540_v29 = vmax.f32 %v536_v23, 0.0  ;;  %v537_v30 = vadd.f32 %v533_v22, %v527_v24 }
 0x10b   :  { %v538_v31 = vmax.f32 %v534_v27, 0.0  ;;  %v535_v32 = vadd.f32 %v531_v26, %v519_v28 }
 0x10c   :  { %544 = vst.msk [vmem:[#allocation2 + $0x10] sm:$0xff] %vm376_vm0, %v540_v29  ;;  %v541_v33 = vmax.f32 %v537_v30, 0.0 }
 0x10d   :  { %542 = vst.msk [vmem:[#allocation2] sm:$0xff] %vm376_vm0, %v538_v31  ;;  %v539_v34 = vmax.f32 %v535_v32, 0.0 }
 0x10e   :  { %545 = vst.msk [vmem:[#allocation2 + $0x18] sm:$0xff] %vm376_vm0, %v541_v33 }
 0x10f   :  { %543 = vst.msk [vmem:[#allocation2 + $0x8] sm:$0xff] %vm376_vm0, %v539_v34 }
 0x110   :  { %749 = shalt.err (!%p746_p4)
}
 0x111   :  { %s750_s14 = scalar_lea.hbm %s965_s4, 512 }
 0x112   :  { %p751_p5 = scmp.ne.s32.totalorder %s965_s4, %s750_s14  ;;  %p754_p6 = scmp.lt.u32.totalorder %s750_s14, %s965_s4 }
 0x114   :  { %p756_p7 = pnand %p754_p6, %p751_p5 }
 0x116   :  { %759 = shalt.err (!%p756_p7)
}
 0x117   :  { %s763_s19 = smov 128   ;;  %s764_s20 = smov 8  }
 0x118   :  { %557 = dma.vmem_to_hbm [thread:$0]  %s552_s11, 512, %s965_s4, [#allocation3], %s763_s19, %s763_s19, %s764_s20  }
 0x119   :  { %760 = dma.done.wait [#allocation3], 512  }
 0x11a   :  { %761 = vsyncadd [#allocation3], 4294966784 }
 0x11b   :  { %561 = vsyncpa [#allocation3], 1 }

</bundles_post_ra>
